<compile_context>
chip_gen: v5e
topology: v5e:2x2
jax: 0.10.0
libtpu: 0.0.40
codegen_flags: <defaults>
</compile_context>

<pallas_src>
import functools

import jax
import jax.numpy as jnp
from jax import lax
from jax.experimental import pallas as pl
from jax.experimental.pallas import tpu as pltpu

F32 = jnp.float32
SMEM = pltpu.MemorySpace.SMEM


# ----------------------------------------------------------------------------
# Fused forward kernel: one grid step == one batch element (O objects, H hidden)
# ----------------------------------------------------------------------------
def fused_transformer_kernel(*refs, depth, objects, heads, channels):
    C = channels
    O = objects
    H = C * heads
    hd = H // heads          # head_dim
    n_rep = H // C           # repeat / mean-reduce factor of the embeddings
    scale = 1.0 / float(hd) ** 0.5

    alphas_ref, x_ref = refs[0], refs[1]
    o_ref = refs[-1]
    w = refs[2:-1]

    idx = 0

    def take(n):
        nonlocal idx
        out = w[idx:idx + n]
        idx += n
        return out

    in_w1t, in_b1, in_w2t, in_b2 = take(4)
    layer_ws = [(take(4), take(3)) for _ in range(depth)]
    out_w1t, out_b1, out_w2t, out_b2 = take(4)

    x = x_ref[0]                                              # (O, C)

    # ---- InputEmbeding: repeat(x,'b c -> b (n c)') + alpha * MLP(x) ----
    skip = jnp.concatenate([x] * n_rep, axis=1)               # (O, H)
    e = jnp.maximum(x, 0.0)
    e = jnp.dot(e, in_w1t[...], preferred_element_type=F32) + in_b1[...]
    e = jnp.maximum(e, 0.0)
    e = jnp.dot(e, in_w2t[...], preferred_element_type=F32) + in_b2[...]
    y = skip + alphas_ref[0] * e                              # (O, H)

    for li in range(depth):
        (wqkv_t, bqkv, wo_t, bo), (wx_t, bx, wh_t) = layer_ws[li]
        a_attn = alphas_ref[1 + 2 * li]
        a_l0rd = alphas_ref[2 + 2 * li]

        # ---- AlphaAttention: y + alpha * MHA(y, y, y) over the object axis ----
        qkv = jnp.dot(y, wqkv_t[...], preferred_element_type=F32) + bqkv[...]   # (O, 3H)
        head_outs = []
        for h in range(heads):
            lo = h * hd
            qh = qkv[:, lo:lo + hd]                           # (O, hd)
            kh = qkv[:, H + lo:H + lo + hd]
            vh = qkv[:, 2 * H + lo:2 * H + lo + hd]
            # q @ k^T without materializing a transpose.
            s = lax.dot_general(qh, kh, (((1,), (1,)), ((), ())),
                                preferred_element_type=F32) * scale             # (O, O)
            s = s - jnp.max(s, axis=-1, keepdims=True)
            p = jnp.exp(s)
            p = p / jnp.sum(p, axis=-1, keepdims=True)
            head_outs.append(jnp.dot(p, vh, preferred_element_type=F32))        # (O, hd)
        attn = jnp.concatenate(head_outs, axis=-1)                              # (O, H)
        attn = jnp.dot(attn, wo_t[...], preferred_element_type=F32) + bo[...]
        y = y + a_attn * attn

        # ---- EpropAlphaGateL0rd: y + alpha * GateL0RD(y), fresh zero hidden state ----
        # Folded x-projection: columns = [g | r | p | o], each H wide -> (O, 4H)=(O,128).
        z = jnp.dot(y, wx_t[...], preferred_element_type=F32) + bx[...]
        g = jnp.tanh(jnp.maximum(z[:, 0:H], 0.0))             # ReTanh gate (h-term is 0)
        r = jnp.tanh(z[:, H:2 * H])                           # (h-term is 0)
        h_new = g * r                                         # h' = g*r + (1-g)*0
        zh = jnp.dot(h_new, wh_t[...], preferred_element_type=F32)              # (O, 2H)
        p_out = jnp.tanh(z[:, 2 * H:3 * H] + zh[:, 0:H])
        o_gate = jax.nn.sigmoid(z[:, 3 * H:4 * H] + zh[:, H:2 * H])
        y = y + a_l0rd * (o_gate * p_out)

    # ---- OutputEmbeding: reduce(y,'b (n c) -> b c','mean') + alpha * MLP(y) ----
    skip = y[:, 0:C]
    for j in range(1, n_rep):
        skip = skip + y[:, j * C:(j + 1) * C]
    skip = skip * (1.0 / n_rep)
    e = jnp.maximum(y, 0.0)
    e = jnp.dot(e, out_w1t[...], preferred_element_type=F32) + out_b1[...]
    e = jnp.maximum(e, 0.0)
    e = jnp.dot(e, out_w2t[...], preferred_element_type=F32) + out_b2[...]
    o_ref[0] = skip + alphas_ref[1 + 2 * depth] * e            # (O, C)


# ----------------------------------------------------------------------------
# Host wrapper: one pallas_call, grid over batch (parallel -> 2 TCs on v7x)
# ----------------------------------------------------------------------------
def transformer_forward(x, params, *, batch_size, num_objects, channels, heads, depth):
    B, O, C = batch_size, num_objects, channels
    H = C * heads
    x3 = x.reshape(B, O, C)                                   # '(b o) c -> b o c'

    flat = []
    ie = params["in_emb"]
    flat += [ie["w1t"], ie["b1"], ie["w2t"], ie["b2"]]
    for li in range(depth):
        at = params["attn"][li]
        flat += [at["wqkv_t"], at["bqkv"], at["wo_t"], at["bo"]]
        l0 = params["l0rd"][li]
        flat += [l0["wx_t"], l0["bx"], l0["wh_t"]]
    oe = params["out_emb"]
    flat += [oe["w1t"], oe["b1"], oe["w2t"], oe["b2"]]

    def full_spec(arr):
        nd = arr.ndim
        # Weights/biases: full array resident in VMEM, same block for every grid step.
        return pl.BlockSpec(arr.shape, lambda b, _nd=nd: (0,) * _nd)

    in_specs = [pl.BlockSpec(memory_space=SMEM),               # alpha gates (scalars)
                pl.BlockSpec((1, O, C), lambda b: (b, 0, 0))]  # per-batch activation block
    in_specs += [full_spec(a) for a in flat]
    out_specs = pl.BlockSpec((1, O, C), lambda b: (b, 0, 0))

    kernel = functools.partial(fused_transformer_kernel, depth=depth,
                               objects=O, heads=heads, channels=C)

    # Advisory cost estimate (tiny kernel -> keep XLA from over-scheduling around it).
    rows = B * O
    hd = H // heads
    macs = C * H + H * H
    macs += depth * (H * 3 * H + heads * (2 * O * hd) + H * H + H * 4 * H + H * 2 * H)
    macs += H * C + C * C
    flops = 2 * rows * macs
    transc = rows * depth * (heads * O + 3 * H + H)
    bytes_accessed = 4 * (int(x3.size) + sum(int(a.size) for a in flat)
                          + int(params["alphas"].size) + B * O * C)
    cost = pl.CostEstimate(flops=int(flops), transcendentals=int(transc),
                           bytes_accessed=int(bytes_accessed))

    y3 = pl.pallas_call(
        kernel,
        out_shape=jax.ShapeDtypeStruct((B, O, C), F32),
        grid=(B,),
        in_specs=in_specs,
        out_specs=out_specs,
        compiler_params=pltpu.CompilerParams(
            dimension_semantics=("parallel",)),
        cost_estimate=cost,
    )(params["alphas"], x3, *flat)
    return y3.reshape(B * O, C)                               # 'b o c -> (b o) c'


# ----------------------------------------------------------------------------
# Deterministic parameter init (PyTorch nn.Linear shapes, then pre-transposed / folded)
# ----------------------------------------------------------------------------
def init_params(key, channels, heads, depth, alpha_init=0.5):
    H = channels * heads
    keys = iter(jax.random.split(key, 4 + depth * 8))

    def lin_w(out_f, in_f):
        bound = 1.0 / (in_f ** 0.5)
        return jax.random.uniform(next(keys), (out_f, in_f), F32, -bound, bound)

    def zeros_b(n):
        return jnp.zeros((1, n), F32)

    in_emb = dict(w1t=lin_w(H, channels).T, b1=zeros_b(H),
                  w2t=lin_w(H, H).T, b2=zeros_b(H))
    out_emb = dict(w1t=lin_w(channels, H).T, b1=zeros_b(channels),
                   w2t=lin_w(channels, channels).T, b2=zeros_b(channels))

    attn, l0rd = [], []
    for _ in range(depth):
        attn.append(dict(wqkv_t=lin_w(3 * H, H).T, bqkv=zeros_b(3 * H),
                         wo_t=lin_w(H, H).T, bo=zeros_b(H)))
        # L0rd: fold the four x-projections [g, r, p, o] into one (H, 4H) weight and the
        # p/o h-projections into one (H, 2H) weight; the g/r h-projections are dead
        # (hidden state starts at zero) and are not materialized at all.
        wgx, wrx, wpx, wox = lin_w(H, H), lin_w(H, H), lin_w(H, H), lin_w(H, H)
        wph, woh = lin_w(H, H), lin_w(H, H)
        bg, br, bp, bo = zeros_b(H), zeros_b(H), zeros_b(H), zeros_b(H)
        l0rd.append(dict(
            wx_t=jnp.concatenate([wgx, wrx, wpx, wox], axis=0).T,   # (H, 4H)
            bx=jnp.concatenate([bg, br, bp, bo], axis=1),           # (1, 4H)
            wh_t=jnp.concatenate([wph, woh], axis=0).T))            # (H, 2H)

    # alpha order: [input_emb, (attn, l0rd) * depth, output_emb]
    alphas = jnp.full((2 + 2 * depth,), alpha_init, F32)
    return dict(alphas=alphas, in_emb=in_emb, attn=attn, l0rd=l0rd, out_emb=out_emb)


if __name__ == "__main__":
    channels = 8          # num_inputs = num_outputs
    heads = 4             # num_hidden = channels * heads = 32
    num_objects = 4
    batch_size = 2
    depth = 2
    # reg_lambda / dropout only affect training -> irrelevant for this forward pass.

    key = jax.random.PRNGKey(0)
    pkey, xkey = jax.random.split(key)
    params = init_params(pkey, channels, heads, depth)

    # Module input: (batch * num_objects, channels)
    x = jax.random.normal(xkey, (batch_size * num_objects, channels), F32)

    out = transformer_forward(x, params,
                              batch_size=batch_size, num_objects=num_objects,
                              channels=channels, heads=heads, depth=depth)
    out = jax.block_until_ready(out)
    assert out.shape == (batch_size * num_objects, channels)
    assert bool(jnp.all(jnp.isfinite(out)))
    print("KERNEL_OK")
</pallas_src>

<mosaic_0001>
module attributes {stable_mosaic.version = 11 : i64} {
  func.func @fused_transformer_kernel(%arg0: i32, %arg1: memref<6xf32, #tpu.memory_space<smem>>, %arg2: memref<1x4x8xf32, #tpu.memory_space<vmem>>, %arg3: memref<8x32xf32, #tpu.memory_space<vmem>>, %arg4: memref<1x32xf32, #tpu.memory_space<vmem>>, %arg5: memref<32x32xf32, #tpu.memory_space<vmem>>, %arg6: memref<1x32xf32, #tpu.memory_space<vmem>>, %arg7: memref<32x96xf32, #tpu.memory_space<vmem>>, %arg8: memref<1x96xf32, #tpu.memory_space<vmem>>, %arg9: memref<32x32xf32, #tpu.memory_space<vmem>>, %arg10: memref<1x32xf32, #tpu.memory_space<vmem>>, %arg11: memref<32x128xf32, #tpu.memory_space<vmem>>, %arg12: memref<1x128xf32, #tpu.memory_space<vmem>>, %arg13: memref<32x64xf32, #tpu.memory_space<vmem>>, %arg14: memref<32x96xf32, #tpu.memory_space<vmem>>, %arg15: memref<1x96xf32, #tpu.memory_space<vmem>>, %arg16: memref<32x32xf32, #tpu.memory_space<vmem>>, %arg17: memref<1x32xf32, #tpu.memory_space<vmem>>, %arg18: memref<32x128xf32, #tpu.memory_space<vmem>>, %arg19: memref<1x128xf32, #tpu.memory_space<vmem>>, %arg20: memref<32x64xf32, #tpu.memory_space<vmem>>, %arg21: memref<32x8xf32, #tpu.memory_space<vmem>>, %arg22: memref<1x8xf32, #tpu.memory_space<vmem>>, %arg23: memref<8x8xf32, #tpu.memory_space<vmem>>, %arg24: memref<1x8xf32, #tpu.memory_space<vmem>>, %arg25: memref<1x4x8xf32, #tpu.memory_space<vmem>>) attributes {dimension_semantics = [#tpu.dimension_semantics<parallel>], iteration_bounds = array<i64: 2>, scalar_prefetch = 0 : i64, scratch_operands = 0 : i64, tpu.core_type = #tpu.core_type<tc>, window_params = [{transform_indices = @transform_0, window_bounds = array<i64: 6>}, {transform_indices = @transform_1, window_bounds = array<i64: 1, 4, 8>}, {pipeline_mode = #tpu.pipeline_mode<synchronous>, transform_indices = @transform_2, window_bounds = array<i64: 8, 32>}, {pipeline_mode = #tpu.pipeline_mode<synchronous>, transform_indices = @transform_3, window_bounds = array<i64: 1, 32>}, {pipeline_mode = #tpu.pipeline_mode<synchronous>, transform_indices = @transform_4, window_bounds = array<i64: 32, 32>}, {pipeline_mode = #tpu.pipeline_mode<synchronous>, transform_indices = @transform_5, window_bounds = array<i64: 1, 32>}, {pipeline_mode = #tpu.pipeline_mode<synchronous>, transform_indices = @transform_6, window_bounds = array<i64: 32, 96>}, {pipeline_mode = #tpu.pipeline_mode<synchronous>, transform_indices = @transform_7, window_bounds = array<i64: 1, 96>}, {pipeline_mode = #tpu.pipeline_mode<synchronous>, transform_indices = @transform_8, window_bounds = array<i64: 32, 32>}, {pipeline_mode = #tpu.pipeline_mode<synchronous>, transform_indices = @transform_9, window_bounds = array<i64: 1, 32>}, {pipeline_mode = #tpu.pipeline_mode<synchronous>, transform_indices = @transform_10, window_bounds = array<i64: 32, 128>}, {pipeline_mode = #tpu.pipeline_mode<synchronous>, transform_indices = @transform_11, window_bounds = array<i64: 1, 128>}, {pipeline_mode = #tpu.pipeline_mode<synchronous>, transform_indices = @transform_12, window_bounds = array<i64: 32, 64>}, {pipeline_mode = #tpu.pipeline_mode<synchronous>, transform_indices = @transform_13, window_bounds = array<i64: 32, 96>}, {pipeline_mode = #tpu.pipeline_mode<synchronous>, transform_indices = @transform_14, window_bounds = array<i64: 1, 96>}, {pipeline_mode = #tpu.pipeline_mode<synchronous>, transform_indices = @transform_15, window_bounds = array<i64: 32, 32>}, {pipeline_mode = #tpu.pipeline_mode<synchronous>, transform_indices = @transform_16, window_bounds = array<i64: 1, 32>}, {pipeline_mode = #tpu.pipeline_mode<synchronous>, transform_indices = @transform_17, window_bounds = array<i64: 32, 128>}, {pipeline_mode = #tpu.pipeline_mode<synchronous>, transform_indices = @transform_18, window_bounds = array<i64: 1, 128>}, {pipeline_mode = #tpu.pipeline_mode<synchronous>, transform_indices = @transform_19, window_bounds = array<i64: 32, 64>}, {pipeline_mode = #tpu.pipeline_mode<synchronous>, transform_indices = @transform_20, window_bounds = array<i64: 32, 8>}, {pipeline_mode = #tpu.pipeline_mode<synchronous>, transform_indices = @transform_21, window_bounds = array<i64: 1, 8>}, {pipeline_mode = #tpu.pipeline_mode<synchronous>, transform_indices = @transform_22, window_bounds = array<i64: 8, 8>}, {pipeline_mode = #tpu.pipeline_mode<synchronous>, transform_indices = @transform_23, window_bounds = array<i64: 1, 8>}, {transform_indices = @transform_24, window_bounds = array<i64: 1, 4, 8>}]} {
    %c0 = arith.constant 0 : index
    %c0_0 = arith.constant 0 : index
    %c0_1 = arith.constant 0 : index
    %0 = vector.load %arg2[%c0, %c0_0, %c0_1] : memref<1x4x8xf32, #tpu.memory_space<vmem>>, vector<1x4x8xf32>
    %1 = vector.shape_cast %0 : vector<1x4x8xf32> to vector<4x8xf32>
    %2 = tpu.concatenate %1, %1, %1, %1 in 1 : vector<4x8xf32>, vector<4x8xf32>, vector<4x8xf32>, vector<4x8xf32> -> vector<4x32xf32>
    %cst = arith.constant 0.000000e+00 : f32
    %3 = vector.broadcast %cst : f32 to vector<4x8xf32>
    %4 = arith.maximumf %1, %3 : vector<4x8xf32>
    %c0_2 = arith.constant 0 : index
    %c0_3 = arith.constant 0 : index
    %5 = vector.load %arg3[%c0_2, %c0_3] : memref<8x32xf32, #tpu.memory_space<vmem>>, vector<8x32xf32>
    %cst_4 = arith.constant dense<0.000000e+00> : vector<4x32xf32>
    %6 = tpu.matmul %4, %5, %cst_4 {dimension_numbers = #tpu.dot_dimension_numbers<[1], [0], [0], [1], [0, 0, 1, 1], [], []>} : vector<4x8xf32>, vector<8x32xf32>, vector<4x32xf32> -> vector<4x32xf32>
    %c0_5 = arith.constant 0 : index
    %c0_6 = arith.constant 0 : index
    %7 = vector.load %arg4[%c0_5, %c0_6] : memref<1x32xf32, #tpu.memory_space<vmem>>, vector<1x32xf32>
    %8 = vector.broadcast %7 : vector<1x32xf32> to vector<4x32xf32>
    %9 = arith.addf %6, %8 : vector<4x32xf32>
    %cst_7 = arith.constant 0.000000e+00 : f32
    %10 = vector.broadcast %cst_7 : f32 to vector<4x32xf32>
    %11 = arith.maximumf %9, %10 : vector<4x32xf32>
    %c0_8 = arith.constant 0 : index
    %c0_9 = arith.constant 0 : index
    %12 = vector.load %arg5[%c0_8, %c0_9] : memref<32x32xf32, #tpu.memory_space<vmem>>, vector<32x32xf32>
    %cst_10 = arith.constant dense<0.000000e+00> : vector<4x32xf32>
    %13 = tpu.matmul %11, %12, %cst_10 {dimension_numbers = #tpu.dot_dimension_numbers<[1], [0], [0], [1], [0, 0, 1, 1], [], []>} : vector<4x32xf32>, vector<32x32xf32>, vector<4x32xf32> -> vector<4x32xf32>
    %c0_11 = arith.constant 0 : index
    %c0_12 = arith.constant 0 : index
    %14 = vector.load %arg6[%c0_11, %c0_12] : memref<1x32xf32, #tpu.memory_space<vmem>>, vector<1x32xf32>
    %15 = vector.broadcast %14 : vector<1x32xf32> to vector<4x32xf32>
    %16 = arith.addf %13, %15 : vector<4x32xf32>
    %c0_13 = arith.constant 0 : index
    %17 = memref.load %arg1[%c0_13] : memref<6xf32, #tpu.memory_space<smem>>
    %18 = vector.broadcast %17 : f32 to vector<4x32xf32>
    %19 = arith.mulf %18, %16 : vector<4x32xf32>
    %20 = arith.addf %2, %19 : vector<4x32xf32>
    %c1 = arith.constant 1 : index
    %21 = memref.load %arg1[%c1] : memref<6xf32, #tpu.memory_space<smem>>
    %c2 = arith.constant 2 : index
    %22 = memref.load %arg1[%c2] : memref<6xf32, #tpu.memory_space<smem>>
    %c0_14 = arith.constant 0 : index
    %c0_15 = arith.constant 0 : index
    %23 = vector.load %arg7[%c0_14, %c0_15] : memref<32x96xf32, #tpu.memory_space<vmem>>, vector<32x96xf32>
    %cst_16 = arith.constant dense<0.000000e+00> : vector<4x96xf32>
    %24 = tpu.matmul %20, %23, %cst_16 {dimension_numbers = #tpu.dot_dimension_numbers<[1], [0], [0], [1], [0, 0, 1, 1], [], []>} : vector<4x32xf32>, vector<32x96xf32>, vector<4x96xf32> -> vector<4x96xf32>
    %c0_17 = arith.constant 0 : index
    %c0_18 = arith.constant 0 : index
    %25 = vector.load %arg8[%c0_17, %c0_18] : memref<1x96xf32, #tpu.memory_space<vmem>>, vector<1x96xf32>
    %26 = vector.broadcast %25 : vector<1x96xf32> to vector<4x96xf32>
    %27 = arith.addf %24, %26 : vector<4x96xf32>
    %28 = vector.extract_strided_slice %27 {offsets = [0, 0], sizes = [4, 8], strides = [1, 1]} : vector<4x96xf32> to vector<4x8xf32>
    %29 = vector.extract_strided_slice %27 {offsets = [0, 32], sizes = [4, 8], strides = [1, 1]} : vector<4x96xf32> to vector<4x8xf32>
    %30 = vector.extract_strided_slice %27 {offsets = [0, 64], sizes = [4, 8], strides = [1, 1]} : vector<4x96xf32> to vector<4x8xf32>
    %cst_19 = arith.constant dense<0.000000e+00> : vector<4x4xf32>
    %31 = tpu.matmul %28, %29, %cst_19 {dimension_numbers = #tpu.dot_dimension_numbers<[1], [1], [0], [0], [0, 0, 1, 0], [], []>} : vector<4x8xf32>, vector<4x8xf32>, vector<4x4xf32> -> vector<4x4xf32>
    %cst_20 = arith.constant 0.353553385 : f32
    %32 = vector.broadcast %cst_20 : f32 to vector<4x4xf32>
    %33 = arith.mulf %31, %32 : vector<4x4xf32>
    %cst_21 = arith.constant dense<0xFF800000> : vector<4xf32>
    %34 = vector.multi_reduction <maximumf>, %33, %cst_21 [1] : vector<4x4xf32> to vector<4xf32>
    %35 = vector.shape_cast %34 : vector<4xf32> to vector<4x1xf32>
    %36 = vector.broadcast %35 : vector<4x1xf32> to vector<4x4xf32>
    %37 = arith.subf %33, %36 : vector<4x4xf32>
    %38 = math.exp %37 : vector<4x4xf32>
    %cst_22 = arith.constant dense<0.000000e+00> : vector<4xf32>
    %39 = vector.multi_reduction <add>, %38, %cst_22 [1] : vector<4x4xf32> to vector<4xf32>
    %40 = vector.shape_cast %39 : vector<4xf32> to vector<4x1xf32>
    %41 = vector.broadcast %40 : vector<4x1xf32> to vector<4x4xf32>
    %42 = arith.divf %38, %41 : vector<4x4xf32>
    %cst_23 = arith.constant dense<0.000000e+00> : vector<4x8xf32>
    %43 = tpu.matmul %42, %30, %cst_23 {dimension_numbers = #tpu.dot_dimension_numbers<[1], [0], [0], [1], [0, 0, 1, 1], [], []>} : vector<4x4xf32>, vector<4x8xf32>, vector<4x8xf32> -> vector<4x8xf32>
    %44 = vector.extract_strided_slice %27 {offsets = [0, 8], sizes = [4, 8], strides = [1, 1]} : vector<4x96xf32> to vector<4x8xf32>
    %45 = vector.extract_strided_slice %27 {offsets = [0, 40], sizes = [4, 8], strides = [1, 1]} : vector<4x96xf32> to vector<4x8xf32>
    %46 = vector.extract_strided_slice %27 {offsets = [0, 72], sizes = [4, 8], strides = [1, 1]} : vector<4x96xf32> to vector<4x8xf32>
    %cst_24 = arith.constant dense<0.000000e+00> : vector<4x4xf32>
    %47 = tpu.matmul %44, %45, %cst_24 {dimension_numbers = #tpu.dot_dimension_numbers<[1], [1], [0], [0], [0, 0, 1, 0], [], []>} : vector<4x8xf32>, vector<4x8xf32>, vector<4x4xf32> -> vector<4x4xf32>
    %cst_25 = arith.constant 0.353553385 : f32
    %48 = vector.broadcast %cst_25 : f32 to vector<4x4xf32>
    %49 = arith.mulf %47, %48 : vector<4x4xf32>
    %cst_26 = arith.constant dense<0xFF800000> : vector<4xf32>
    %50 = vector.multi_reduction <maximumf>, %49, %cst_26 [1] : vector<4x4xf32> to vector<4xf32>
    %51 = vector.shape_cast %50 : vector<4xf32> to vector<4x1xf32>
    %52 = vector.broadcast %51 : vector<4x1xf32> to vector<4x4xf32>
    %53 = arith.subf %49, %52 : vector<4x4xf32>
    %54 = math.exp %53 : vector<4x4xf32>
    %cst_27 = arith.constant dense<0.000000e+00> : vector<4xf32>
    %55 = vector.multi_reduction <add>, %54, %cst_27 [1] : vector<4x4xf32> to vector<4xf32>
    %56 = vector.shape_cast %55 : vector<4xf32> to vector<4x1xf32>
    %57 = vector.broadcast %56 : vector<4x1xf32> to vector<4x4xf32>
    %58 = arith.divf %54, %57 : vector<4x4xf32>
    %cst_28 = arith.constant dense<0.000000e+00> : vector<4x8xf32>
    %59 = tpu.matmul %58, %46, %cst_28 {dimension_numbers = #tpu.dot_dimension_numbers<[1], [0], [0], [1], [0, 0, 1, 1], [], []>} : vector<4x4xf32>, vector<4x8xf32>, vector<4x8xf32> -> vector<4x8xf32>
    %60 = vector.extract_strided_slice %27 {offsets = [0, 16], sizes = [4, 8], strides = [1, 1]} : vector<4x96xf32> to vector<4x8xf32>
    %61 = vector.extract_strided_slice %27 {offsets = [0, 48], sizes = [4, 8], strides = [1, 1]} : vector<4x96xf32> to vector<4x8xf32>
    %62 = vector.extract_strided_slice %27 {offsets = [0, 80], sizes = [4, 8], strides = [1, 1]} : vector<4x96xf32> to vector<4x8xf32>
    %cst_29 = arith.constant dense<0.000000e+00> : vector<4x4xf32>
    %63 = tpu.matmul %60, %61, %cst_29 {dimension_numbers = #tpu.dot_dimension_numbers<[1], [1], [0], [0], [0, 0, 1, 0], [], []>} : vector<4x8xf32>, vector<4x8xf32>, vector<4x4xf32> -> vector<4x4xf32>
    %cst_30 = arith.constant 0.353553385 : f32
    %64 = vector.broadcast %cst_30 : f32 to vector<4x4xf32>
    %65 = arith.mulf %63, %64 : vector<4x4xf32>
    %cst_31 = arith.constant dense<0xFF800000> : vector<4xf32>
    %66 = vector.multi_reduction <maximumf>, %65, %cst_31 [1] : vector<4x4xf32> to vector<4xf32>
    %67 = vector.shape_cast %66 : vector<4xf32> to vector<4x1xf32>
    %68 = vector.broadcast %67 : vector<4x1xf32> to vector<4x4xf32>
    %69 = arith.subf %65, %68 : vector<4x4xf32>
    %70 = math.exp %69 : vector<4x4xf32>
    %cst_32 = arith.constant dense<0.000000e+00> : vector<4xf32>
    %71 = vector.multi_reduction <add>, %70, %cst_32 [1] : vector<4x4xf32> to vector<4xf32>
    %72 = vector.shape_cast %71 : vector<4xf32> to vector<4x1xf32>
    %73 = vector.broadcast %72 : vector<4x1xf32> to vector<4x4xf32>
    %74 = arith.divf %70, %73 : vector<4x4xf32>
    %cst_33 = arith.constant dense<0.000000e+00> : vector<4x8xf32>
    %75 = tpu.matmul %74, %62, %cst_33 {dimension_numbers = #tpu.dot_dimension_numbers<[1], [0], [0], [1], [0, 0, 1, 1], [], []>} : vector<4x4xf32>, vector<4x8xf32>, vector<4x8xf32> -> vector<4x8xf32>
    %76 = vector.extract_strided_slice %27 {offsets = [0, 24], sizes = [4, 8], strides = [1, 1]} : vector<4x96xf32> to vector<4x8xf32>
    %77 = vector.extract_strided_slice %27 {offsets = [0, 56], sizes = [4, 8], strides = [1, 1]} : vector<4x96xf32> to vector<4x8xf32>
    %78 = vector.extract_strided_slice %27 {offsets = [0, 88], sizes = [4, 8], strides = [1, 1]} : vector<4x96xf32> to vector<4x8xf32>
    %cst_34 = arith.constant dense<0.000000e+00> : vector<4x4xf32>
    %79 = tpu.matmul %76, %77, %cst_34 {dimension_numbers = #tpu.dot_dimension_numbers<[1], [1], [0], [0], [0, 0, 1, 0], [], []>} : vector<4x8xf32>, vector<4x8xf32>, vector<4x4xf32> -> vector<4x4xf32>
    %cst_35 = arith.constant 0.353553385 : f32
    %80 = vector.broadcast %cst_35 : f32 to vector<4x4xf32>
    %81 = arith.mulf %79, %80 : vector<4x4xf32>
    %cst_36 = arith.constant dense<0xFF800000> : vector<4xf32>
    %82 = vector.multi_reduction <maximumf>, %81, %cst_36 [1] : vector<4x4xf32> to vector<4xf32>
    %83 = vector.shape_cast %82 : vector<4xf32> to vector<4x1xf32>
    %84 = vector.broadcast %83 : vector<4x1xf32> to vector<4x4xf32>
    %85 = arith.subf %81, %84 : vector<4x4xf32>
    %86 = math.exp %85 : vector<4x4xf32>
    %cst_37 = arith.constant dense<0.000000e+00> : vector<4xf32>
    %87 = vector.multi_reduction <add>, %86, %cst_37 [1] : vector<4x4xf32> to vector<4xf32>
    %88 = vector.shape_cast %87 : vector<4xf32> to vector<4x1xf32>
    %89 = vector.broadcast %88 : vector<4x1xf32> to vector<4x4xf32>
    %90 = arith.divf %86, %89 : vector<4x4xf32>
    %cst_38 = arith.constant dense<0.000000e+00> : vector<4x8xf32>
    %91 = tpu.matmul %90, %78, %cst_38 {dimension_numbers = #tpu.dot_dimension_numbers<[1], [0], [0], [1], [0, 0, 1, 1], [], []>} : vector<4x4xf32>, vector<4x8xf32>, vector<4x8xf32> -> vector<4x8xf32>
    %92 = tpu.concatenate %43, %59, %75, %91 in 1 : vector<4x8xf32>, vector<4x8xf32>, vector<4x8xf32>, vector<4x8xf32> -> vector<4x32xf32>
    %c0_39 = arith.constant 0 : index
    %c0_40 = arith.constant 0 : index
    %93 = vector.load %arg9[%c0_39, %c0_40] : memref<32x32xf32, #tpu.memory_space<vmem>>, vector<32x32xf32>
    %cst_41 = arith.constant dense<0.000000e+00> : vector<4x32xf32>
    %94 = tpu.matmul %92, %93, %cst_41 {dimension_numbers = #tpu.dot_dimension_numbers<[1], [0], [0], [1], [0, 0, 1, 1], [], []>} : vector<4x32xf32>, vector<32x32xf32>, vector<4x32xf32> -> vector<4x32xf32>
    %c0_42 = arith.constant 0 : index
    %c0_43 = arith.constant 0 : index
    %95 = vector.load %arg10[%c0_42, %c0_43] : memref<1x32xf32, #tpu.memory_space<vmem>>, vector<1x32xf32>
    %96 = vector.broadcast %95 : vector<1x32xf32> to vector<4x32xf32>
    %97 = arith.addf %94, %96 : vector<4x32xf32>
    %98 = vector.broadcast %21 : f32 to vector<4x32xf32>
    %99 = arith.mulf %98, %97 : vector<4x32xf32>
    %100 = arith.addf %20, %99 : vector<4x32xf32>
    %c0_44 = arith.constant 0 : index
    %c0_45 = arith.constant 0 : index
    %101 = vector.load %arg11[%c0_44, %c0_45] : memref<32x128xf32, #tpu.memory_space<vmem>>, vector<32x128xf32>
    %cst_46 = arith.constant dense<0.000000e+00> : vector<4x128xf32>
    %102 = tpu.matmul %100, %101, %cst_46 {dimension_numbers = #tpu.dot_dimension_numbers<[1], [0], [0], [1], [0, 0, 1, 1], [], []>} : vector<4x32xf32>, vector<32x128xf32>, vector<4x128xf32> -> vector<4x128xf32>
    %c0_47 = arith.constant 0 : index
    %c0_48 = arith.constant 0 : index
    %103 = vector.load %arg12[%c0_47, %c0_48] : memref<1x128xf32, #tpu.memory_space<vmem>>, vector<1x128xf32>
    %104 = vector.broadcast %103 : vector<1x128xf32> to vector<4x128xf32>
    %105 = arith.addf %102, %104 : vector<4x128xf32>
    %106 = vector.extract_strided_slice %105 {offsets = [0, 0], sizes = [4, 32], strides = [1, 1]} : vector<4x128xf32> to vector<4x32xf32>
    %cst_49 = arith.constant 0.000000e+00 : f32
    %107 = vector.broadcast %cst_49 : f32 to vector<4x32xf32>
    %108 = arith.maximumf %106, %107 : vector<4x32xf32>
    %109 = math.tanh %108 : vector<4x32xf32>
    %110 = vector.extract_strided_slice %105 {offsets = [0, 32], sizes = [4, 32], strides = [1, 1]} : vector<4x128xf32> to vector<4x32xf32>
    %111 = math.tanh %110 : vector<4x32xf32>
    %112 = arith.mulf %109, %111 : vector<4x32xf32>
    %c0_50 = arith.constant 0 : index
    %c0_51 = arith.constant 0 : index
    %113 = vector.load %arg13[%c0_50, %c0_51] : memref<32x64xf32, #tpu.memory_space<vmem>>, vector<32x64xf32>
    %cst_52 = arith.constant dense<0.000000e+00> : vector<4x64xf32>
    %114 = tpu.matmul %112, %113, %cst_52 {dimension_numbers = #tpu.dot_dimension_numbers<[1], [0], [0], [1], [0, 0, 1, 1], [], []>} : vector<4x32xf32>, vector<32x64xf32>, vector<4x64xf32> -> vector<4x64xf32>
    %115 = vector.extract_strided_slice %105 {offsets = [0, 64], sizes = [4, 32], strides = [1, 1]} : vector<4x128xf32> to vector<4x32xf32>
    %116 = vector.extract_strided_slice %114 {offsets = [0, 0], sizes = [4, 32], strides = [1, 1]} : vector<4x64xf32> to vector<4x32xf32>
    %117 = arith.addf %115, %116 : vector<4x32xf32>
    %118 = math.tanh %117 : vector<4x32xf32>
    %119 = vector.extract_strided_slice %105 {offsets = [0, 96], sizes = [4, 32], strides = [1, 1]} : vector<4x128xf32> to vector<4x32xf32>
    %120 = vector.extract_strided_slice %114 {offsets = [0, 32], sizes = [4, 32], strides = [1, 1]} : vector<4x64xf32> to vector<4x32xf32>
    %121 = arith.addf %119, %120 : vector<4x32xf32>
    %122 = arith.negf %121 : vector<4x32xf32>
    %123 = math.exp %122 : vector<4x32xf32>
    %cst_53 = arith.constant 1.000000e+00 : f32
    %124 = vector.broadcast %cst_53 : f32 to vector<4x32xf32>
    %125 = arith.addf %124, %123 : vector<4x32xf32>
    %126 = arith.divf %124, %125 : vector<4x32xf32>
    %127 = arith.mulf %126, %118 : vector<4x32xf32>
    %128 = vector.broadcast %22 : f32 to vector<4x32xf32>
    %129 = arith.mulf %128, %127 : vector<4x32xf32>
    %130 = arith.addf %100, %129 : vector<4x32xf32>
    %c3 = arith.constant 3 : index
    %131 = memref.load %arg1[%c3] : memref<6xf32, #tpu.memory_space<smem>>
    %c4 = arith.constant 4 : index
    %132 = memref.load %arg1[%c4] : memref<6xf32, #tpu.memory_space<smem>>
    %c0_54 = arith.constant 0 : index
    %c0_55 = arith.constant 0 : index
    %133 = vector.load %arg14[%c0_54, %c0_55] : memref<32x96xf32, #tpu.memory_space<vmem>>, vector<32x96xf32>
    %cst_56 = arith.constant dense<0.000000e+00> : vector<4x96xf32>
    %134 = tpu.matmul %130, %133, %cst_56 {dimension_numbers = #tpu.dot_dimension_numbers<[1], [0], [0], [1], [0, 0, 1, 1], [], []>} : vector<4x32xf32>, vector<32x96xf32>, vector<4x96xf32> -> vector<4x96xf32>
    %c0_57 = arith.constant 0 : index
    %c0_58 = arith.constant 0 : index
    %135 = vector.load %arg15[%c0_57, %c0_58] : memref<1x96xf32, #tpu.memory_space<vmem>>, vector<1x96xf32>
    %136 = vector.broadcast %135 : vector<1x96xf32> to vector<4x96xf32>
    %137 = arith.addf %134, %136 : vector<4x96xf32>
    %138 = vector.extract_strided_slice %137 {offsets = [0, 0], sizes = [4, 8], strides = [1, 1]} : vector<4x96xf32> to vector<4x8xf32>
    %139 = vector.extract_strided_slice %137 {offsets = [0, 32], sizes = [4, 8], strides = [1, 1]} : vector<4x96xf32> to vector<4x8xf32>
    %140 = vector.extract_strided_slice %137 {offsets = [0, 64], sizes = [4, 8], strides = [1, 1]} : vector<4x96xf32> to vector<4x8xf32>
    %cst_59 = arith.constant dense<0.000000e+00> : vector<4x4xf32>
    %141 = tpu.matmul %138, %139, %cst_59 {dimension_numbers = #tpu.dot_dimension_numbers<[1], [1], [0], [0], [0, 0, 1, 0], [], []>} : vector<4x8xf32>, vector<4x8xf32>, vector<4x4xf32> -> vector<4x4xf32>
    %cst_60 = arith.constant 0.353553385 : f32
    %142 = vector.broadcast %cst_60 : f32 to vector<4x4xf32>
    %143 = arith.mulf %141, %142 : vector<4x4xf32>
    %cst_61 = arith.constant dense<0xFF800000> : vector<4xf32>
    %144 = vector.multi_reduction <maximumf>, %143, %cst_61 [1] : vector<4x4xf32> to vector<4xf32>
    %145 = vector.shape_cast %144 : vector<4xf32> to vector<4x1xf32>
    %146 = vector.broadcast %145 : vector<4x1xf32> to vector<4x4xf32>
    %147 = arith.subf %143, %146 : vector<4x4xf32>
    %148 = math.exp %147 : vector<4x4xf32>
    %cst_62 = arith.constant dense<0.000000e+00> : vector<4xf32>
    %149 = vector.multi_reduction <add>, %148, %cst_62 [1] : vector<4x4xf32> to vector<4xf32>
    %150 = vector.shape_cast %149 : vector<4xf32> to vector<4x1xf32>
    %151 = vector.broadcast %150 : vector<4x1xf32> to vector<4x4xf32>
    %152 = arith.divf %148, %151 : vector<4x4xf32>
    %cst_63 = arith.constant dense<0.000000e+00> : vector<4x8xf32>
    %153 = tpu.matmul %152, %140, %cst_63 {dimension_numbers = #tpu.dot_dimension_numbers<[1], [0], [0], [1], [0, 0, 1, 1], [], []>} : vector<4x4xf32>, vector<4x8xf32>, vector<4x8xf32> -> vector<4x8xf32>
    %154 = vector.extract_strided_slice %137 {offsets = [0, 8], sizes = [4, 8], strides = [1, 1]} : vector<4x96xf32> to vector<4x8xf32>
    %155 = vector.extract_strided_slice %137 {offsets = [0, 40], sizes = [4, 8], strides = [1, 1]} : vector<4x96xf32> to vector<4x8xf32>
    %156 = vector.extract_strided_slice %137 {offsets = [0, 72], sizes = [4, 8], strides = [1, 1]} : vector<4x96xf32> to vector<4x8xf32>
    %cst_64 = arith.constant dense<0.000000e+00> : vector<4x4xf32>
    %157 = tpu.matmul %154, %155, %cst_64 {dimension_numbers = #tpu.dot_dimension_numbers<[1], [1], [0], [0], [0, 0, 1, 0], [], []>} : vector<4x8xf32>, vector<4x8xf32>, vector<4x4xf32> -> vector<4x4xf32>
    %cst_65 = arith.constant 0.353553385 : f32
    %158 = vector.broadcast %cst_65 : f32 to vector<4x4xf32>
    %159 = arith.mulf %157, %158 : vector<4x4xf32>
    %cst_66 = arith.constant dense<0xFF800000> : vector<4xf32>
    %160 = vector.multi_reduction <maximumf>, %159, %cst_66 [1] : vector<4x4xf32> to vector<4xf32>
    %161 = vector.shape_cast %160 : vector<4xf32> to vector<4x1xf32>
    %162 = vector.broadcast %161 : vector<4x1xf32> to vector<4x4xf32>
    %163 = arith.subf %159, %162 : vector<4x4xf32>
    %164 = math.exp %163 : vector<4x4xf32>
    %cst_67 = arith.constant dense<0.000000e+00> : vector<4xf32>
    %165 = vector.multi_reduction <add>, %164, %cst_67 [1] : vector<4x4xf32> to vector<4xf32>
    %166 = vector.shape_cast %165 : vector<4xf32> to vector<4x1xf32>
    %167 = vector.broadcast %166 : vector<4x1xf32> to vector<4x4xf32>
    %168 = arith.divf %164, %167 : vector<4x4xf32>
    %cst_68 = arith.constant dense<0.000000e+00> : vector<4x8xf32>
    %169 = tpu.matmul %168, %156, %cst_68 {dimension_numbers = #tpu.dot_dimension_numbers<[1], [0], [0], [1], [0, 0, 1, 1], [], []>} : vector<4x4xf32>, vector<4x8xf32>, vector<4x8xf32> -> vector<4x8xf32>
    %170 = vector.extract_strided_slice %137 {offsets = [0, 16], sizes = [4, 8], strides = [1, 1]} : vector<4x96xf32> to vector<4x8xf32>
    %171 = vector.extract_strided_slice %137 {offsets = [0, 48], sizes = [4, 8], strides = [1, 1]} : vector<4x96xf32> to vector<4x8xf32>
    %172 = vector.extract_strided_slice %137 {offsets = [0, 80], sizes = [4, 8], strides = [1, 1]} : vector<4x96xf32> to vector<4x8xf32>
    %cst_69 = arith.constant dense<0.000000e+00> : vector<4x4xf32>
    %173 = tpu.matmul %170, %171, %cst_69 {dimension_numbers = #tpu.dot_dimension_numbers<[1], [1], [0], [0], [0, 0, 1, 0], [], []>} : vector<4x8xf32>, vector<4x8xf32>, vector<4x4xf32> -> vector<4x4xf32>
    %cst_70 = arith.constant 0.353553385 : f32
    %174 = vector.broadcast %cst_70 : f32 to vector<4x4xf32>
    %175 = arith.mulf %173, %174 : vector<4x4xf32>
    %cst_71 = arith.constant dense<0xFF800000> : vector<4xf32>
    %176 = vector.multi_reduction <maximumf>, %175, %cst_71 [1] : vector<4x4xf32> to vector<4xf32>
    %177 = vector.shape_cast %176 : vector<4xf32> to vector<4x1xf32>
    %178 = vector.broadcast %177 : vector<4x1xf32> to vector<4x4xf32>
    %179 = arith.subf %175, %178 : vector<4x4xf32>
    %180 = math.exp %179 : vector<4x4xf32>
    %cst_72 = arith.constant dense<0.000000e+00> : vector<4xf32>
    %181 = vector.multi_reduction <add>, %180, %cst_72 [1] : vector<4x4xf32> to vector<4xf32>
    %182 = vector.shape_cast %181 : vector<4xf32> to vector<4x1xf32>
    %183 = vector.broadcast %182 : vector<4x1xf32> to vector<4x4xf32>
    %184 = arith.divf %180, %183 : vector<4x4xf32>
    %cst_73 = arith.constant dense<0.000000e+00> : vector<4x8xf32>
    %185 = tpu.matmul %184, %172, %cst_73 {dimension_numbers = #tpu.dot_dimension_numbers<[1], [0], [0], [1], [0, 0, 1, 1], [], []>} : vector<4x4xf32>, vector<4x8xf32>, vector<4x8xf32> -> vector<4x8xf32>
    %186 = vector.extract_strided_slice %137 {offsets = [0, 24], sizes = [4, 8], strides = [1, 1]} : vector<4x96xf32> to vector<4x8xf32>
    %187 = vector.extract_strided_slice %137 {offsets = [0, 56], sizes = [4, 8], strides = [1, 1]} : vector<4x96xf32> to vector<4x8xf32>
    %188 = vector.extract_strided_slice %137 {offsets = [0, 88], sizes = [4, 8], strides = [1, 1]} : vector<4x96xf32> to vector<4x8xf32>
    %cst_74 = arith.constant dense<0.000000e+00> : vector<4x4xf32>
    %189 = tpu.matmul %186, %187, %cst_74 {dimension_numbers = #tpu.dot_dimension_numbers<[1], [1], [0], [0], [0, 0, 1, 0], [], []>} : vector<4x8xf32>, vector<4x8xf32>, vector<4x4xf32> -> vector<4x4xf32>
    %cst_75 = arith.constant 0.353553385 : f32
    %190 = vector.broadcast %cst_75 : f32 to vector<4x4xf32>
    %191 = arith.mulf %189, %190 : vector<4x4xf32>
    %cst_76 = arith.constant dense<0xFF800000> : vector<4xf32>
    %192 = vector.multi_reduction <maximumf>, %191, %cst_76 [1] : vector<4x4xf32> to vector<4xf32>
    %193 = vector.shape_cast %192 : vector<4xf32> to vector<4x1xf32>
    %194 = vector.broadcast %193 : vector<4x1xf32> to vector<4x4xf32>
    %195 = arith.subf %191, %194 : vector<4x4xf32>
    %196 = math.exp %195 : vector<4x4xf32>
    %cst_77 = arith.constant dense<0.000000e+00> : vector<4xf32>
    %197 = vector.multi_reduction <add>, %196, %cst_77 [1] : vector<4x4xf32> to vector<4xf32>
    %198 = vector.shape_cast %197 : vector<4xf32> to vector<4x1xf32>
    %199 = vector.broadcast %198 : vector<4x1xf32> to vector<4x4xf32>
    %200 = arith.divf %196, %199 : vector<4x4xf32>
    %cst_78 = arith.constant dense<0.000000e+00> : vector<4x8xf32>
    %201 = tpu.matmul %200, %188, %cst_78 {dimension_numbers = #tpu.dot_dimension_numbers<[1], [0], [0], [1], [0, 0, 1, 1], [], []>} : vector<4x4xf32>, vector<4x8xf32>, vector<4x8xf32> -> vector<4x8xf32>
    %202 = tpu.concatenate %153, %169, %185, %201 in 1 : vector<4x8xf32>, vector<4x8xf32>, vector<4x8xf32>, vector<4x8xf32> -> vector<4x32xf32>
    %c0_79 = arith.constant 0 : index
    %c0_80 = arith.constant 0 : index
    %203 = vector.load %arg16[%c0_79, %c0_80] : memref<32x32xf32, #tpu.memory_space<vmem>>, vector<32x32xf32>
    %cst_81 = arith.constant dense<0.000000e+00> : vector<4x32xf32>
    %204 = tpu.matmul %202, %203, %cst_81 {dimension_numbers = #tpu.dot_dimension_numbers<[1], [0], [0], [1], [0, 0, 1, 1], [], []>} : vector<4x32xf32>, vector<32x32xf32>, vector<4x32xf32> -> vector<4x32xf32>
    %c0_82 = arith.constant 0 : index
    %c0_83 = arith.constant 0 : index
    %205 = vector.load %arg17[%c0_82, %c0_83] : memref<1x32xf32, #tpu.memory_space<vmem>>, vector<1x32xf32>
    %206 = vector.broadcast %205 : vector<1x32xf32> to vector<4x32xf32>
    %207 = arith.addf %204, %206 : vector<4x32xf32>
    %208 = vector.broadcast %131 : f32 to vector<4x32xf32>
    %209 = arith.mulf %208, %207 : vector<4x32xf32>
    %210 = arith.addf %130, %209 : vector<4x32xf32>
    %c0_84 = arith.constant 0 : index
    %c0_85 = arith.constant 0 : index
    %211 = vector.load %arg18[%c0_84, %c0_85] : memref<32x128xf32, #tpu.memory_space<vmem>>, vector<32x128xf32>
    %cst_86 = arith.constant dense<0.000000e+00> : vector<4x128xf32>
    %212 = tpu.matmul %210, %211, %cst_86 {dimension_numbers = #tpu.dot_dimension_numbers<[1], [0], [0], [1], [0, 0, 1, 1], [], []>} : vector<4x32xf32>, vector<32x128xf32>, vector<4x128xf32> -> vector<4x128xf32>
    %c0_87 = arith.constant 0 : index
    %c0_88 = arith.constant 0 : index
    %213 = vector.load %arg19[%c0_87, %c0_88] : memref<1x128xf32, #tpu.memory_space<vmem>>, vector<1x128xf32>
    %214 = vector.broadcast %213 : vector<1x128xf32> to vector<4x128xf32>
    %215 = arith.addf %212, %214 : vector<4x128xf32>
    %216 = vector.extract_strided_slice %215 {offsets = [0, 0], sizes = [4, 32], strides = [1, 1]} : vector<4x128xf32> to vector<4x32xf32>
    %cst_89 = arith.constant 0.000000e+00 : f32
    %217 = vector.broadcast %cst_89 : f32 to vector<4x32xf32>
    %218 = arith.maximumf %216, %217 : vector<4x32xf32>
    %219 = math.tanh %218 : vector<4x32xf32>
    %220 = vector.extract_strided_slice %215 {offsets = [0, 32], sizes = [4, 32], strides = [1, 1]} : vector<4x128xf32> to vector<4x32xf32>
    %221 = math.tanh %220 : vector<4x32xf32>
    %222 = arith.mulf %219, %221 : vector<4x32xf32>
    %c0_90 = arith.constant 0 : index
    %c0_91 = arith.constant 0 : index
    %223 = vector.load %arg20[%c0_90, %c0_91] : memref<32x64xf32, #tpu.memory_space<vmem>>, vector<32x64xf32>
    %cst_92 = arith.constant dense<0.000000e+00> : vector<4x64xf32>
    %224 = tpu.matmul %222, %223, %cst_92 {dimension_numbers = #tpu.dot_dimension_numbers<[1], [0], [0], [1], [0, 0, 1, 1], [], []>} : vector<4x32xf32>, vector<32x64xf32>, vector<4x64xf32> -> vector<4x64xf32>
    %225 = vector.extract_strided_slice %215 {offsets = [0, 64], sizes = [4, 32], strides = [1, 1]} : vector<4x128xf32> to vector<4x32xf32>
    %226 = vector.extract_strided_slice %224 {offsets = [0, 0], sizes = [4, 32], strides = [1, 1]} : vector<4x64xf32> to vector<4x32xf32>
    %227 = arith.addf %225, %226 : vector<4x32xf32>
    %228 = math.tanh %227 : vector<4x32xf32>
    %229 = vector.extract_strided_slice %215 {offsets = [0, 96], sizes = [4, 32], strides = [1, 1]} : vector<4x128xf32> to vector<4x32xf32>
    %230 = vector.extract_strided_slice %224 {offsets = [0, 32], sizes = [4, 32], strides = [1, 1]} : vector<4x64xf32> to vector<4x32xf32>
    %231 = arith.addf %229, %230 : vector<4x32xf32>
    %232 = arith.negf %231 : vector<4x32xf32>
    %233 = math.exp %232 : vector<4x32xf32>
    %cst_93 = arith.constant 1.000000e+00 : f32
    %234 = vector.broadcast %cst_93 : f32 to vector<4x32xf32>
    %235 = arith.addf %234, %233 : vector<4x32xf32>
    %236 = arith.divf %234, %235 : vector<4x32xf32>
    %237 = arith.mulf %236, %228 : vector<4x32xf32>
    %238 = vector.broadcast %132 : f32 to vector<4x32xf32>
    %239 = arith.mulf %238, %237 : vector<4x32xf32>
    %240 = arith.addf %210, %239 : vector<4x32xf32>
    %241 = vector.extract_strided_slice %240 {offsets = [0, 0], sizes = [4, 8], strides = [1, 1]} : vector<4x32xf32> to vector<4x8xf32>
    %242 = vector.extract_strided_slice %240 {offsets = [0, 8], sizes = [4, 8], strides = [1, 1]} : vector<4x32xf32> to vector<4x8xf32>
    %243 = arith.addf %241, %242 : vector<4x8xf32>
    %244 = vector.extract_strided_slice %240 {offsets = [0, 16], sizes = [4, 8], strides = [1, 1]} : vector<4x32xf32> to vector<4x8xf32>
    %245 = arith.addf %243, %244 : vector<4x8xf32>
    %246 = vector.extract_strided_slice %240 {offsets = [0, 24], sizes = [4, 8], strides = [1, 1]} : vector<4x32xf32> to vector<4x8xf32>
    %247 = arith.addf %245, %246 : vector<4x8xf32>
    %cst_94 = arith.constant 2.500000e-01 : f32
    %248 = vector.broadcast %cst_94 : f32 to vector<4x8xf32>
    %249 = arith.mulf %247, %248 : vector<4x8xf32>
    %cst_95 = arith.constant 0.000000e+00 : f32
    %250 = vector.broadcast %cst_95 : f32 to vector<4x32xf32>
    %251 = arith.maximumf %240, %250 : vector<4x32xf32>
    %c0_96 = arith.constant 0 : index
    %c0_97 = arith.constant 0 : index
    %252 = vector.load %arg21[%c0_96, %c0_97] : memref<32x8xf32, #tpu.memory_space<vmem>>, vector<32x8xf32>
    %cst_98 = arith.constant dense<0.000000e+00> : vector<4x8xf32>
    %253 = tpu.matmul %251, %252, %cst_98 {dimension_numbers = #tpu.dot_dimension_numbers<[1], [0], [0], [1], [0, 0, 1, 1], [], []>} : vector<4x32xf32>, vector<32x8xf32>, vector<4x8xf32> -> vector<4x8xf32>
    %c0_99 = arith.constant 0 : index
    %c0_100 = arith.constant 0 : index
    %254 = vector.load %arg22[%c0_99, %c0_100] : memref<1x8xf32, #tpu.memory_space<vmem>>, vector<1x8xf32>
    %255 = vector.broadcast %254 : vector<1x8xf32> to vector<4x8xf32>
    %256 = arith.addf %253, %255 : vector<4x8xf32>
    %cst_101 = arith.constant 0.000000e+00 : f32
    %257 = vector.broadcast %cst_101 : f32 to vector<4x8xf32>
    %258 = arith.maximumf %256, %257 : vector<4x8xf32>
    %c0_102 = arith.constant 0 : index
    %c0_103 = arith.constant 0 : index
    %259 = vector.load %arg23[%c0_102, %c0_103] : memref<8x8xf32, #tpu.memory_space<vmem>>, vector<8x8xf32>
    %cst_104 = arith.constant dense<0.000000e+00> : vector<4x8xf32>
    %260 = tpu.matmul %258, %259, %cst_104 {dimension_numbers = #tpu.dot_dimension_numbers<[1], [0], [0], [1], [0, 0, 1, 1], [], []>} : vector<4x8xf32>, vector<8x8xf32>, vector<4x8xf32> -> vector<4x8xf32>
    %c0_105 = arith.constant 0 : index
    %c0_106 = arith.constant 0 : index
    %261 = vector.load %arg24[%c0_105, %c0_106] : memref<1x8xf32, #tpu.memory_space<vmem>>, vector<1x8xf32>
    %262 = vector.broadcast %261 : vector<1x8xf32> to vector<4x8xf32>
    %263 = arith.addf %260, %262 : vector<4x8xf32>
    %c5 = arith.constant 5 : index
    %264 = memref.load %arg1[%c5] : memref<6xf32, #tpu.memory_space<smem>>
    %265 = vector.broadcast %264 : f32 to vector<4x8xf32>
    %266 = arith.mulf %265, %263 : vector<4x8xf32>
    %267 = arith.addf %249, %266 : vector<4x8xf32>
    %c0_107 = arith.constant 0 : index
    %c0_108 = arith.constant 0 : index
    %c0_109 = arith.constant 0 : index
    %268 = vector.load %arg25[%c0_107, %c0_108, %c0_109] : memref<1x4x8xf32, #tpu.memory_space<vmem>>, vector<1x4x8xf32>
    %269 = vector.shape_cast %268 : vector<1x4x8xf32> to vector<4x8xf32>
    %270 = vector.shape_cast %267 : vector<4x8xf32> to vector<1x4x8xf32>
    tpu.vector_store %arg25[%c0_107, %c0_108, %c0_109], %270 {strides = array<i32>} : memref<1x4x8xf32, #tpu.memory_space<vmem>>, vector<1x4x8xf32>,
    return
  }
  func.func @transform_0(%arg0: i32) -> i32 {
    %c0_i32 = arith.constant 0 : i32
    %c0_i32_0 = arith.constant 0 : i32
    return %c0_i32 : i32
  }
  func.func @transform_1(%arg0: i32) -> (i32, i32, i32) {
    %c0_i32 = arith.constant 0 : i32
    %c0_i32_0 = arith.constant 0 : i32
    %c0_i32_1 = arith.constant 0 : i32
    return %arg0, %c0_i32, %c0_i32_0 : i32, i32, i32
  }
  func.func @transform_2(%arg0: i32) -> (i32, i32) {
    %c0_i32 = arith.constant 0 : i32
    %c0_i32_0 = arith.constant 0 : i32
    %c0_i32_1 = arith.constant 0 : i32
    return %c0_i32, %c0_i32_0 : i32, i32
  }
  func.func @transform_3(%arg0: i32) -> (i32, i32) {
    %c0_i32 = arith.constant 0 : i32
    %c0_i32_0 = arith.constant 0 : i32
    %c0_i32_1 = arith.constant 0 : i32
    return %c0_i32, %c0_i32_0 : i32, i32
  }
  func.func @transform_4(%arg0: i32) -> (i32, i32) {
    %c0_i32 = arith.constant 0 : i32
    %c0_i32_0 = arith.constant 0 : i32
    %c0_i32_1 = arith.constant 0 : i32
    return %c0_i32, %c0_i32_0 : i32, i32
  }
  func.func @transform_5(%arg0: i32) -> (i32, i32) {
    %c0_i32 = arith.constant 0 : i32
    %c0_i32_0 = arith.constant 0 : i32
    %c0_i32_1 = arith.constant 0 : i32
    return %c0_i32, %c0_i32_0 : i32, i32
  }
  func.func @transform_6(%arg0: i32) -> (i32, i32) {
    %c0_i32 = arith.constant 0 : i32
    %c0_i32_0 = arith.constant 0 : i32
    %c0_i32_1 = arith.constant 0 : i32
    return %c0_i32, %c0_i32_0 : i32, i32
  }
  func.func @transform_7(%arg0: i32) -> (i32, i32) {
    %c0_i32 = arith.constant 0 : i32
    %c0_i32_0 = arith.constant 0 : i32
    %c0_i32_1 = arith.constant 0 : i32
    return %c0_i32, %c0_i32_0 : i32, i32
  }
  func.func @transform_8(%arg0: i32) -> (i32, i32) {
    %c0_i32 = arith.constant 0 : i32
    %c0_i32_0 = arith.constant 0 : i32
    %c0_i32_1 = arith.constant 0 : i32
    return %c0_i32, %c0_i32_0 : i32, i32
  }
  func.func @transform_9(%arg0: i32) -> (i32, i32) {
    %c0_i32 = arith.constant 0 : i32
    %c0_i32_0 = arith.constant 0 : i32
    %c0_i32_1 = arith.constant 0 : i32
    return %c0_i32, %c0_i32_0 : i32, i32
  }
  func.func @transform_10(%arg0: i32) -> (i32, i32) {
    %c0_i32 = arith.constant 0 : i32
    %c0_i32_0 = arith.constant 0 : i32
    %c0_i32_1 = arith.constant 0 : i32
    return %c0_i32, %c0_i32_0 : i32, i32
  }
  func.func @transform_11(%arg0: i32) -> (i32, i32) {
    %c0_i32 = arith.constant 0 : i32
    %c0_i32_0 = arith.constant 0 : i32
    %c0_i32_1 = arith.constant 0 : i32
    return %c0_i32, %c0_i32_0 : i32, i32
  }
  func.func @transform_12(%arg0: i32) -> (i32, i32) {
    %c0_i32 = arith.constant 0 : i32
    %c0_i32_0 = arith.constant 0 : i32
    %c0_i32_1 = arith.constant 0 : i32
    return %c0_i32, %c0_i32_0 : i32, i32
  }
  func.func @transform_13(%arg0: i32) -> (i32, i32) {
    %c0_i32 = arith.constant 0 : i32
    %c0_i32_0 = arith.constant 0 : i32
    %c0_i32_1 = arith.constant 0 : i32
    return %c0_i32, %c0_i32_0 : i32, i32
  }
  func.func @transform_14(%arg0: i32) -> (i32, i32) {
    %c0_i32 = arith.constant 0 : i32
    %c0_i32_0 = arith.constant 0 : i32
    %c0_i32_1 = arith.constant 0 : i32
    return %c0_i32, %c0_i32_0 : i32, i32
  }
  func.func @transform_15(%arg0: i32) -> (i32, i32) {
    %c0_i32 = arith.constant 0 : i32
    %c0_i32_0 = arith.constant 0 : i32
    %c0_i32_1 = arith.constant 0 : i32
    return %c0_i32, %c0_i32_0 : i32, i32
  }
  func.func @transform_16(%arg0: i32) -> (i32, i32) {
    %c0_i32 = arith.constant 0 : i32
    %c0_i32_0 = arith.constant 0 : i32
    %c0_i32_1 = arith.constant 0 : i32
    return %c0_i32, %c0_i32_0 : i32, i32
  }
  func.func @transform_17(%arg0: i32) -> (i32, i32) {
    %c0_i32 = arith.constant 0 : i32
    %c0_i32_0 = arith.constant 0 : i32
    %c0_i32_1 = arith.constant 0 : i32
    return %c0_i32, %c0_i32_0 : i32, i32
  }
  func.func @transform_18(%arg0: i32) -> (i32, i32) {
    %c0_i32 = arith.constant 0 : i32
    %c0_i32_0 = arith.constant 0 : i32
    %c0_i32_1 = arith.constant 0 : i32
    return %c0_i32, %c0_i32_0 : i32, i32
  }
  func.func @transform_19(%arg0: i32) -> (i32, i32) {
    %c0_i32 = arith.constant 0 : i32
    %c0_i32_0 = arith.constant 0 : i32
    %c0_i32_1 = arith.constant 0 : i32
    return %c0_i32, %c0_i32_0 : i32, i32
  }
  func.func @transform_20(%arg0: i32) -> (i32, i32) {
    %c0_i32 = arith.constant 0 : i32
    %c0_i32_0 = arith.constant 0 : i32
    %c0_i32_1 = arith.constant 0 : i32
    return %c0_i32, %c0_i32_0 : i32, i32
  }
  func.func @transform_21(%arg0: i32) -> (i32, i32) {
    %c0_i32 = arith.constant 0 : i32
    %c0_i32_0 = arith.constant 0 : i32
    %c0_i32_1 = arith.constant 0 : i32
    return %c0_i32, %c0_i32_0 : i32, i32
  }
  func.func @transform_22(%arg0: i32) -> (i32, i32) {
    %c0_i32 = arith.constant 0 : i32
    %c0_i32_0 = arith.constant 0 : i32
    %c0_i32_1 = arith.constant 0 : i32
    return %c0_i32, %c0_i32_0 : i32, i32
  }
  func.func @transform_23(%arg0: i32) -> (i32, i32) {
    %c0_i32 = arith.constant 0 : i32
    %c0_i32_0 = arith.constant 0 : i32
    %c0_i32_1 = arith.constant 0 : i32
    return %c0_i32, %c0_i32_0 : i32, i32
  }
  func.func @transform_24(%arg0: i32) -> (i32, i32, i32) {
    %c0_i32 = arith.constant 0 : i32
    %c0_i32_0 = arith.constant 0 : i32
    %c0_i32_1 = arith.constant 0 : i32
    return %arg0, %c0_i32, %c0_i32_0 : i32, i32, i32
  }
}

</mosaic_0001>

<bundles_post_ra>
// kernel: tpu_custom_call.1
= control target key start
LH: loop header
LB: loop body
LE: loop exit
PB: predicated region body
PF: predicated region fallthrough
CT: control target
= control target key end

     0   :  { %s4039_s0 = inlined_call_operand.hbm [shape: f32[6], index: 0, kind: input, shape index: {}]   ;;  %s4040_s1 = inlined_call_operand.vmem [shape: f32[2,4,8], index: 1, kind: input, shape index: {}]   ;;  %s4041_s2 = inlined_call_operand.hbm [shape: f32[8,32], index: 2, kind: input, shape index: {}]   ;;  %s4042_s3 = inlined_call_operand.hbm [shape: f32[1,32], index: 3, kind: input, shape index: {}]   ;;  %s4043_s4 = inlined_call_operand.vmem [shape: f32[32,32], index: 4, kind: input, shape index: {}]   ;;  %s4044_s5 = inlined_call_operand.hbm [shape: f32[1,32], index: 5, kind: input, shape index: {}]   ;;  %s4045_s6 = inlined_call_operand.hbm [shape: f32[32,96], index: 6, kind: input, shape index: {}]   ;;  %s4046_s7 = inlined_call_operand.hbm [shape: f32[1,96], index: 7, kind: input, shape index: {}]   ;;  %s4047_s8 = inlined_call_operand.hbm [shape: f32[32,32], index: 8, kind: input, shape index: {}]   ;;  %s4048_s9 = inlined_call_operand.hbm [shape: f32[1,32], index: 9, kind: input, shape index: {}]   ;;  %s4049_s10 = inlined_call_operand.hbm [shape: f32[32,128], index: 10, kind: input, shape index: {}]   ;;  %s4050_s11 = inlined_call_operand.hbm [shape: f32[1,128], index: 11, kind: input, shape index: {}]   ;;  %s4051_s12 = inlined_call_operand.hbm [shape: f32[32,64], index: 12, kind: input, shape index: {}]   ;;  %s4052_s13 = inlined_call_operand.hbm [shape: f32[32,96], index: 13, kind: input, shape index: {}]   ;;  %s4053_s14 = inlined_call_operand.hbm [shape: f32[1,96], index: 14, kind: input, shape index: {}]   ;;  %s4054_s15 = inlined_call_operand.hbm [shape: f32[32,32], index: 15, kind: input, shape index: {}]   ;;  %s4055_s16 = inlined_call_operand.hbm [shape: f32[1,32], index: 16, kind: input, shape index: {}]   ;;  %s4056_s17 = inlined_call_operand.hbm [shape: f32[32,128], index: 17, kind: input, shape index: {}]   ;;  %s4057_s18 = inlined_call_operand.vmem [shape: f32[1,128], index: 18, kind: input, shape index: {}]   ;;  %s4058_s19 = inlined_call_operand.hbm [shape: f32[32,64], index: 19, kind: input, shape index: {}]   ;;  %s4059_s20 = inlined_call_operand.vmem [shape: f32[32,8], index: 20, kind: input, shape index: {}]   ;;  %s4060_s21 = inlined_call_operand.vmem [shape: f32[1,8], index: 21, kind: input, shape index: {}]   ;;  %s4061_s22 = inlined_call_operand.vmem [shape: f32[8,8], index: 22, kind: input, shape index: {}]   ;;  %s4062_s23 = inlined_call_operand.vmem [shape: f32[1,8], index: 23, kind: input, shape index: {}]   ;;  %s4063_s24 = inlined_call_operand.hbm [shape: f32[2,4,8], index: 24, kind: output, shape index: {}]  }
   0x1   :  { %4076 = sst [smem:[#allocation49_spill]] %s4039_s0 }
   0x2   :  { %4077 = sst [smem:[#allocation50_spill]] %s4040_s1 }
   0x3   :  { %4078 = sst [smem:[#allocation51_spill]] %s4041_s2 }
   0x4   :  { %4079 = sst [smem:[#allocation52_spill]] %s4042_s3 }
   0x5   :  { %4080 = sst [smem:[#allocation53_spill]] %s4043_s4 }
   0x6   :  { %4081 = sst [smem:[#allocation54_spill]] %s4044_s5 }
   0x7   :  { %4082 = sst [smem:[#allocation55_spill]] %s4045_s6 }
   0x8   :  { %4083 = sst [smem:[#allocation56_spill]] %s4046_s7 }
   0x9   :  { %4084 = sst [smem:[#allocation57_spill]] %s4047_s8 }
   0xa   :  { %4085 = sst [smem:[#allocation58_spill]] %s4049_s10 }
   0xb   :  { %4086 = sst [smem:[#allocation59_spill]] %s4051_s12 }
   0xc   :  { %4087 = sst [smem:[#allocation60_spill]] %s4060_s21 }
   0xd   :  { %4088 = sst [smem:[#allocation61_spill]] %s4062_s23 }
   0xe   :  { %4089 = sst [smem:[#allocation62_spill]] %s4063_s24 }
   0xf   :  { %29 = vsyncpa [#allocation5], 0 }
  0x10   :  { %30 = vsyncpa [#allocation3], 0 }
  0x11   :  { %31 = vsyncpa [#allocation8], 0 }
  0x12   :  { %32 = vsyncpa [#allocation11], 0 }
  0x13   :  { %33 = vsyncpa [#allocation14], 0 }
  0x14   :  { %34 = vsyncpa [#allocation17], 0 }
  0x15   :  { %35 = vsyncpa [#allocation20], 0 }
  0x16   :  { %36 = vsyncpa [#allocation23], 0 }
  0x17   :  { %37 = vsyncpa [#allocation26], 0 }
  0x18   :  { %38 = vsyncpa [#allocation29], 0 }
  0x19   :  { %39 = vsyncpa [#allocation4], 0 }
  0x1a   :  { %41 = vsyncpa [#allocation4 + $0x1], 0  ;;  %s3555_s5 = smov 0   ;;  %s3557_s26 = smov 0  }
  0x1b   :  { %s3559_s27 = smov 0   ;;  %s3561_s28 = smov 0  }
  0x1c LB: > { %4090 = sst [smem:[#allocation42_spill]] %s3382_s5  ;;  %s3576_s6 = sadd.s32 4294967295, %s3394_s28   ;;  %s3394_s28 = sphi %s3561_s28, %s4122_s28   ;;  %s3390_s27 = sphi %s3559_s27, %s4124_s27   ;;  %s3386_s26 = sphi %s3557_s26, %s4126_s26   ;;  %s3382_s5 = sphi %s3555_s5, %s4125_s5  }
  0x1d   : > { %4091 = sst [smem:[#allocation43_spill]] %s3390_s27  ;;  %s2413_s2 = sadd.s32 4294967294, %s3394_s28  }
  0x1e   : > { %4092 = sst [smem:[#allocation44_spill]] %s3394_s28  ;;  %s3580_s29 = sadd.s32 1, %s3394_s28  }
  0x1f   : > { %4093 = sst [smem:[#allocation45_spill]] %s3580_s29  ;;  %s563_s0 = sadd.s32 1, %s3390_s27 }
  0x20   : > { %s560_s7 = ssub.s32 %s3394_s28, %s3580_s29  ;;  %p573_p0 = scmp.ne.s32.totalorder %s3390_s27, %s3386_s26 }
  0x21   : > { %p561_p1 = scmp.eq.s32.totalorder %s560_s7, 0  ;;  %p574_p2 = scmp.eq.s32.totalorder %s3576_s6, 1 }
  0x22   : > { %p579_p3 = scmp.ne.s32.totalorder %s3386_s26, %s3382_s5  ;;  %p580_p4 = scmp.eq.s32.totalorder %s2413_s2, 1 }
  0x23   : > { %s3591_s30 = scalar_select %p561_p1, %s3390_s27, %s563_s0  }
  0x24   : > { %p3593_p5 = por %p574_p2, %p573_p0  ;;  %p3597_p6 = por %p580_p4, %p579_p3 }
  0x25   : > { %4094 = sst [smem:[#allocation46_spill]] %s3591_s30  ;;  %p2414_p7 = scmp.ge.s32.totalorder %s3394_s28, 1 }
  0x26   : > { %s4095_s3 = scalar_select %p3593_p5, 1, 0 }
  0x27   : > { %s4097_s25 = scalar_select %p3597_p6, 1, 0 }
  0x28   : > { %4096 = sst [smem:[#allocation47_spill]] %s4095_s3  ;;  %p587_p8 = scmp.lt.s32.totalorder %s3394_s28, 3 }
  0x29   : > { %4098 = sst [smem:[#allocation48_spill]] %s4097_s25  ;;  %p2634_p9 = scmp.eq.s32.totalorder %s3576_s6, 0 }
  0x2a   : > { %p3604_p10 = pnand %p2414_p7, %p587_p8  ;;  %s4100_s2 = sld [smem:[#allocation52_spill]] }
  0x2b   : > { %s3396_s7 = smov [#allocation7]   ;;  %s4101_s25 = sld [smem:[#allocation55_spill]] }
  0x2c   : > { %p2578_p11 = pneg %p3604_p10  ;;  %s623_s30 = sshll.u32 %s3396_s7, 4  ;;  %s624_s30 = int_to_ptr.vmem [resolvable:$true] %s623_s30 }
  0x2d   : > { %s3397_s4 = smov [#allocation10]   ;;  %s3399_s7 = smov 8  }
  0x2e   : > { %p3618_p12 = pnand %p2634_p9, %p2578_p11  ;;  %s649_s1 = sshll.u32 %s3397_s4, 4  ;;  %s650_s1 = int_to_ptr.vmem [resolvable:$true] %s649_s1 }
  0x2f   : > { %s3400_s24 = smov [#allocation13]   ;;  %s4104_s10 = sld [smem:[#allocation58_spill]] }
  0x30   : > { %s621_s0 = sshll.u32 %s4100_s2, 4  ;;  %s4074_s2 = smov 128   ;;  %s622_s0 = int_to_ptr.hbm [resolvable:$true] %s621_s0 }
  0x31   : > { %s647_s5 = sshll.u32 %s4101_s25, 4  ;;  %s4103_s25 = sld [smem:[#allocation57_spill]]  ;;  %s648_s5 = int_to_ptr.hbm [resolvable:$true] %s647_s5 }
  0x32   : > { %2587 = dma.hbm_to_vmem [thread:$0]  (!%p3618_p12), %s622_s0, 16, %s624_s30, [#allocation8]  }
  0x33   : > { %2593 = dma.hbm_to_vmem [thread:$0]  (!%p3618_p12), %s648_s5, 512, %s650_s1, [#allocation11], %s4074_s2, %s4074_s2, %s3399_s7  }
  0x34   : > { %s675_s23 = sshll.u32 %s3400_s24, 4  ;;  %s3401_s5 = smov [#allocation16]   ;;  %s676_s23 = int_to_ptr.vmem [resolvable:$true] %s675_s23 }
  0x35   : > { %s699_s0 = sshll.u32 %s4104_s10, 4  ;;  %s701_s1 = sshll.u32 %s3401_s5, 4  ;;  %s700_s0 = int_to_ptr.hbm [resolvable:$true] %s699_s0  ;;  %s702_s1 = int_to_ptr.vmem [resolvable:$true] %s701_s1 }
  0x36   : > { %s4105_s12 = sld [smem:[#allocation59_spill]]  ;;  %s754_s4 = sshll.u32 %s4053_s14, 4  ;;  %s755_s4 = int_to_ptr.hbm [resolvable:$true] %s754_s4 }
  0x37   : > { %s673_s3 = sshll.u32 %s4103_s25, 4  ;;  %s3403_s21 = smov [#allocation22]   ;;  %s674_s3 = int_to_ptr.hbm [resolvable:$true] %s673_s3 }
  0x38   : > { %2599 = dma.hbm_to_vmem [thread:$0]  (!%p3618_p12), %s674_s3, 512, %s676_s23, [#allocation14], %s4074_s2, %s4074_s2, %s3399_s7  }
  0x39   : > { %2605 = dma.hbm_to_vmem [thread:$0]  (!%p3618_p12), %s700_s0, 512, %s702_s1, [#allocation17], %s4074_s2, %s4074_s2, %s3399_s7  }
  0x3a   : > { %s3402_s23 = smov [#allocation19]   ;;  %s756_s30 = sshll.u32 %s3403_s21, 4  ;;  %s757_s30 = int_to_ptr.vmem [resolvable:$true] %s756_s30 }
  0x3b   : > { %s727_s3 = sshll.u32 %s3402_s23, 4  ;;  %s780_s0 = sshll.u32 %s4055_s16, 4  ;;  %s728_s3 = int_to_ptr.vmem [resolvable:$true] %s727_s3  ;;  %s781_s0 = int_to_ptr.hbm [resolvable:$true] %s780_s0 }
  0x3c   : > { %s725_s29 = sshll.u32 %s4105_s12, 4  ;;  %s4106_s25 = sld [smem:[#allocation49_spill]]  ;;  %s726_s29 = int_to_ptr.hbm [resolvable:$true] %s725_s29 }
  0x3d   : > { %2611 = dma.hbm_to_vmem [thread:$0]  (!%p3618_p12), %s726_s29, 512, %s728_s3, [#allocation20], %s4074_s2, %s4074_s2, %s3399_s7  }
  0x3e   : > { %2617 = dma.hbm_to_vmem [thread:$0]  (!%p3618_p12), %s755_s4, 16, %s757_s30, [#allocation23]  }
  0x3f   : > { %s3404_s10 = smov [#allocation25]   ;;  %s3405_s29 = smov [#allocation2]  }
  0x40   : > { %s782_s12 = sshll.u32 %s3404_s10, 4  ;;  %s4107_s5 = sld [smem:[#allocation51_spill]]  ;;  %s783_s12 = int_to_ptr.vmem [resolvable:$true] %s782_s12 }
  0x41   : > { %2623 = dma.hbm_to_vmem [thread:$0]  (!%p3618_p12), %s781_s0, 16, %s783_s12, [#allocation26]  }
  0x42   : > { %s599_s23 = sshll.u32 %s4106_s25, 4  ;;  %s3406_s4 = smov [#allocation6]   ;;  %s600_s23 = int_to_ptr.hbm [resolvable:$true] %s599_s23 }
  0x43   : > { %2581 = dma.hbm_to_smem (!%p3618_p12), %s600_s23, 16, %s3405_s29, [#allocation5]  }
  0x44   : > { %s611_s30 = sshll.u32 %s3406_s4, 4  ;;  %s4108_s10 = sld [smem:[#allocation54_spill]]  ;;  %s612_s30 = int_to_ptr.vmem [resolvable:$true] %s611_s30 }
  0x45   : > { %s3407_s12 = smov [#allocation9]   ;;  %s4109_s29 = sld [smem:[#allocation56_spill]] }
  0x46   : > { %s609_s27 = sshll.u32 %s4107_s5, 4  ;;  %s638_s0 = sshll.u32 %s3407_s12, 4  ;;  %s610_s27 = int_to_ptr.hbm [resolvable:$true] %s609_s27  ;;  %s639_s0 = int_to_ptr.vmem [resolvable:$true] %s638_s0 }
  0x47   : > { %2584 = dma.hbm_to_vmem [thread:$0]  (!%p3618_p12), %s610_s27, 128, %s612_s30, [#allocation3]  }
  0x48   : > { %s688_s4 = sshll.u32 %s4048_s9, 4  ;;  %s3408_s1 = smov [#allocation12]   ;;  %s689_s4 = int_to_ptr.hbm [resolvable:$true] %s688_s4 }
  0x49   : > { %s664_s24 = sshll.u32 %s3408_s1, 4  ;;  %s3409_s27 = smov [#allocation15]   ;;  %s665_s24 = int_to_ptr.vmem [resolvable:$true] %s664_s24 }
  0x4a   : > { %s636_s25 = sshll.u32 %s4108_s10, 4  ;;  %s690_s30 = sshll.u32 %s3409_s27, 4  ;;  %s637_s25 = int_to_ptr.hbm [resolvable:$true] %s636_s25  ;;  %s691_s30 = int_to_ptr.vmem [resolvable:$true] %s690_s30 }
  0x4b   : > { %s662_s3 = sshll.u32 %s4109_s29, 4  ;;  %s714_s12 = sshll.u32 %s4050_s11, 4  ;;  %s663_s3 = int_to_ptr.hbm [resolvable:$true] %s662_s3  ;;  %s715_s12 = int_to_ptr.hbm [resolvable:$true] %s714_s12 }
  0x4c   : > { %2590 = dma.hbm_to_vmem [thread:$0]  (!%p3618_p12), %s637_s25, 16, %s639_s0, [#allocation8]  }
  0x4d   : > { %2596 = dma.hbm_to_vmem [thread:$0]  (!%p3618_p12), %s663_s3, 16, %s665_s24, [#allocation11]  }
  0x4e   : > { %2602 = dma.hbm_to_vmem [thread:$0]  (!%p3618_p12), %s689_s4, 16, %s691_s30, [#allocation14]  }
  0x4f   : > { %s739_s23 = sshll.u32 %s4052_s13, 4  ;;  %s3410_s29 = smov [#allocation18]   ;;  %s740_s23 = int_to_ptr.hbm [resolvable:$true] %s739_s23 }
  0x50   : > { %s716_s21 = sshll.u32 %s3410_s29, 4  ;;  %s3411_s3 = smov [#allocation21]   ;;  %s717_s21 = int_to_ptr.vmem [resolvable:$true] %s716_s21 }
  0x51   : > { %2608 = dma.hbm_to_vmem [thread:$0]  (!%p3618_p12), %s715_s12, 16, %s717_s21, [#allocation17]  }
  0x52   : > { %s741_s5 = sshll.u32 %s3411_s3, 4  ;;  %s765_s27 = sshll.u32 %s4054_s15, 4  ;;  %s742_s5 = int_to_ptr.vmem [resolvable:$true] %s741_s5  ;;  %s766_s27 = int_to_ptr.hbm [resolvable:$true] %s765_s27 }
  0x53   : > { %s4110_s4 = smov 128   ;;  %s791_s10 = sshll.u32 %s4056_s17, 4  ;;  %s792_s10 = int_to_ptr.hbm [resolvable:$true] %s791_s10 }
  0x54   : > { %2614 = dma.hbm_to_vmem [thread:$0]  (!%p3618_p12), %s740_s23, 512, %s742_s5, [#allocation20], %s4110_s4, %s4110_s4, %s3399_s7  }
  0x55   : > { %s3412_s12 = smov [#allocation24]   ;;  %s3413_s0 = smov [#allocation27]  }
  0x56   : > { %s767_s25 = sshll.u32 %s3412_s12, 4  ;;  %s793_s29 = sshll.u32 %s3413_s0, 4  ;;  %s768_s25 = int_to_ptr.vmem [resolvable:$true] %s767_s25  ;;  %s794_s29 = int_to_ptr.vmem [resolvable:$true] %s793_s29 }
  0x57   : > { %2620 = dma.hbm_to_vmem [thread:$0]  (!%p3618_p12), %s766_s27, 512, %s768_s25, [#allocation23], %s4110_s4, %s4110_s4, %s3399_s7  }
  0x58   : > { %s808_s23 = sshll.u32 %s4058_s19, 4  ;;  %s3414_s5 = smov [#allocation28]   ;;  %s809_s23 = int_to_ptr.hbm [resolvable:$true] %s808_s23 }
  0x59   : > { %2626 = dma.hbm_to_vmem [thread:$0]  (!%p3618_p12), %s792_s10, 512, %s794_s29, [#allocation26], %s4110_s4, %s4110_s4, %s3399_s7  }
  0x5a   : > { %s810_s1 = sshll.u32 %s3414_s5, 4  ;;  %845 = sbr.rel (%p3604_p10) target bundleno = 4170 (0x104a), region = 116  ;;  %s811_s1 = int_to_ptr.vmem [resolvable:$true] %s810_s1 }
  0x5b   : > { %2629 = dma.hbm_to_vmem [thread:$0]  (!%p3618_p12), %s809_s23, 512, %s811_s1, [#allocation29], %s4110_s4, %s4110_s4, %s3399_s7  }
  0x5f   : > { %3337 = dma.done.wait (%p2634_p9), [#allocation5], 16  }
  0x60   : > { %3339 = vsyncadd (%p2634_p9), [#allocation5], 4294967280 }
  0x61   : > { %3341 = dma.done.wait (%p2634_p9), [#allocation3], 128  }
  0x62   : > { %3343 = vsyncadd (%p2634_p9), [#allocation3], 4294967168 }
  0x63   : > { %3345 = dma.done.wait (%p2634_p9), [#allocation8], 32  }
  0x64   : > { %3347 = vsyncadd (%p2634_p9), [#allocation8], 4294967264 }
  0x65   : > { %3349 = dma.done.wait (%p2634_p9), [#allocation11], 528  }
  0x66   : > { %3351 = vsyncadd (%p2634_p9), [#allocation11], 4294966768 }
  0x67   : > { %3353 = dma.done.wait (%p2634_p9), [#allocation14], 528  }
  0x68   : > { %3355 = vsyncadd (%p2634_p9), [#allocation14], 4294966768 }
  0x69   : > { %3357 = dma.done.wait (%p2634_p9), [#allocation17], 528  }
  0x6a   : > { %3359 = vsyncadd (%p2634_p9), [#allocation17], 4294966768 }
  0x6b   : > { %3361 = dma.done.wait (%p2634_p9), [#allocation20], 1024  }
  0x6c   : > { %3363 = vsyncadd (%p2634_p9), [#allocation20], 4294966272 }
  0x6d   : > { %3365 = dma.done.wait (%p2634_p9), [#allocation23], 528  }
  0x6e   : > { %3367 = vsyncadd (%p2634_p9), [#allocation23], 4294966768 }
  0x6f   : > { %3369 = dma.done.wait (%p2634_p9), [#allocation26], 528  }
  0x70   : > { %3371 = vsyncadd (%p2634_p9), [#allocation26], 4294966768 }
  0x71   : > { %3373 = dma.done.wait (%p2634_p9), [#allocation29], 512  }
  0x72   : > { %3375 = vsyncadd (%p2634_p9), [#allocation29], 4294966784 }
  0x73   : > { %932 = sfence }
  0x74   : > { %v1014_v0 = vld [vmem:[#allocation6] sm:$0xff]  ;;  %p992_p13 = scmp.lt.s32.totalorder %s3576_s6, 1  ;;  %s4111_s7 = sld [smem:[#allocation53_spill]]  ;;  %vm1007_vm0 = vcmask 64512   ;;  %v2735_v7 = vld [vmem:[#allocation7] ss:$0 sm:$0xff] }
  0x75   : > { %1037 = vmatpush.msra.mxu0 %v1014_v0  ;;  %s4112_s2 = sld [smem:[#allocation50_spill]]  ;;  %s3415_s12 = smov 8   ;;  %vm1051_vm1 = vcmask 261120   ;;  %v1084_v11 = vld [vmem:[#allocation10 + $0x18] sm:$0xff]  ;;  %v1083_v12 = vld [vmem:[#allocation10 + $0x10] sm:$0xff]  ;;  %v1082_v13 = vld [vmem:[#allocation10 + $0x8] sm:$0xff] }
  0x76   : > { %s993_s24 = scalar_select %p992_p13, %s3576_s6, 1  ;;  %1104 = vmatpush.msra.mxu2 %v1084_v11  ;;  %v1081_v14 = vld [vmem:[#allocation10] sm:$0xff]  ;;  %v2736_v16 = vld [vmem:[#allocation9] ss:$0 sm:$0xff]  ;;  %vm1009_vm2 = vcmask 130048   ;;  %vm1011_vm3 = vcmask 195584  }
  0x77   : > { %s3416_s25 = smov 24   ;;  %s3417_s0 = smov 16   ;;  %v2737_v27 = vld [vmem:[#allocation12] ss:$0 sm:$0xff]  ;;  %vm1140_vm4 = vcmask 27648   ;;  %vm1171_vm7 = vcmask 1043456  }
  0x78   : > { %s2452_s27 = sshll.u32 %s993_s24, 2  ;;  %1105 = vmatpush.msra.mxu2 %v1083_v12  ;;  %s1075_s28 = sld [smem:[#allocation2]]  ;;  %vm1167_vm10 = vcmask 31744  }
  0x79   : > { %s3418_s8 = smov 80   ;;  %s3419_s24 = smov 88  }
  0x7a   : > { %v1046_v1 = vld [vmem:[%s4111_s7 + $0x18] sm:$0xff]  ;;  %v1045_v4 = vld [vmem:[%s4111_s7 + $0x10] sm:$0xff]  ;;  %v1044_v5 = vld [vmem:[%s4111_s7 + $0x8] sm:$0xff]  ;;  %1106 = vmatpush.msra.mxu2 %v1082_v13  ;;  %s3421_s4 = smov 104   ;;  %s3422_s30 = smov 120  }
  0x7b   : > { %1067 = vmatpush.msra.mxu1 %v1046_v1  ;;  %s995_s10 = scalar_lea.vmem %s4112_s2, %s2452_s27  ;;  %v1043_v6 = vld [vmem:[%s4111_s7] sm:$0xff]  ;;  %s3420_s27 = smov 96  }
  0x7c   : > { %v996_v2 = vld [vmem:[%s995_s10] sm:$0xf]  ;;  %1107 = vmatpush.msra.mxu2 %v1081_v14  ;;  %s3423_s2 = smov 72   ;;  %s3424_s10 = smov 112  }
  0x7d   : > { %v1013_v3 = vmax.f32 %v996_v2, 0.0  ;;  %998 = vrot.lane.b32.xlu0 %v996_v2, %s3415_s12  ;;  %1004 = vrot.lane.b32.xlu1 %v996_v2, %s3416_s25  ;;  %s3425_s29 = smov 56   ;;  %s3426_s21 = smov 40  }
  0x7e   : > { %1068 = vmatpush.msra.mxu1 %v1045_v4  ;;  %v1076_v20 = vstv %s1075_s28  ;;  %s3427_s3 = smov 64   ;;  %s3428_s23 = smov 48  }
  0x7f   : > { %2453 = vmatmul.msk.f32.vlgmr.msra.gmra.mxu0 %vm1007_vm0, %v1013_v3  ;;  %s2455_s5 = sld [smem:[#allocation2 + $0x1]]  ;;  %s3429_s1 = smov 32  }
  0x80   : > { %1069 = vmatpush.msra.mxu1 %v1044_v5  ;;  %s2456_s28 = sld [smem:[#allocation2 + $0x2]] }
  0x82   : > { %1070 = vmatpush.msra.mxu1 %v1043_v6 }
  0x85   : > { %1001 = vrot.lane.b32.xlu0 %v996_v2, %s3417_s0 }
  0xef   : > { %v999_v15 = vpop.permute.xlu0 %998  ;;  %v1005_v22 = vpop.permute.xlu1 %1004 }
  0xf0   : > { %v1008_v17 = vsel %vm1007_vm0, %v996_v2, %v999_v15 }
  0xf7   : > { %v1002_v18 = vpop.permute.xlu0 %1001 }
  0xf8   : > { %v1010_v21 = vsel %vm1009_vm2, %v1008_v17, %v1002_v18 }
  0xf9   : > { %v1012_v25 = vsel %vm1011_vm3, %v1010_v21, %v1005_v22 }
  0xfc   : > { %v1039_v8 = vpop.f32.mrf.mxu0 }
  0xfd   : > { %v1040_v9 = vadd.f32 %v2735_v7, %v1039_v8 }
  0xff   : > { %v1042_v10 = vmax.f32 %v1040_v9, 0.0 }
 0x101   : > { %2454 = vmatmul.msk.f32.vlgmr.msra.gmra.mxu1 %vm1051_vm1, %v1042_v10 }
 0x17e   : > { %v1072_v19 = vpop.f32.mrf.mxu1 }
 0x17f   : > { %v1073_v23 = vadd.f32 %v2736_v16, %v1072_v19 }
 0x181   : > { %v1077_v24 = vmul.f32 %v1076_v20, %v1073_v23 }
 0x183   : > { %v3792_v26 = vadd.f32 %v1077_v24, %v1012_v25 }
 0x185   : > { %2457 = vmatmul.msk.f32.vlgmr.msra.gmra.mxu2 %vm1051_vm1, %v3792_v26 }
 0x208   : > { %v1109_v28 = vpop.f32.mrf.mxu2 }
 0x209   : > { %v3796_v29 = vadd.f32 %v2737_v27, %v1109_v28 }
 0x20b   : > { %1276 = vrot.lane.b32.xlu0 %v3796_v29, %s3418_s8  ;;  %1196 = vrot.lane.b32.xlu2 %v3796_v29, %s3419_s24 }
 0x20c   : > { %1113 = vrot.lane.b32.xlu1 %v3796_v29, %s3420_s27 }
 0x213   : > { %1354 = vrot.lane.b32.xlu0 %v3796_v29, %s3421_s4  ;;  %1194 = vrot.lane.b32.xlu2 %v3796_v29, %s3422_s30 }
 0x214   : > { %1356 = vrot.lane.b32.xlu1 %v3796_v29, %s3423_s2 }
 0x21b   : > { %1274 = vrot.lane.b32.xlu2 %v3796_v29, %s3424_s10 }
 0x265   : > { %v1197_v30 = vpop.permute.xlu2 %1196 }
 0x26d   : > { %v1195_v31 = vpop.permute.xlu2 %1194 }
 0x275   : > { %v1275_v34 = vpop.permute.xlu2 %1274 }
 0x27d   : > { %v1277_v32 = vpop.permute.xlu0 %1276 }
 0x27e   : > { %v1114_v33 = vpop.permute.xlu1 %1113  ;;  %2466 = vmatpush.xpose.msk.msrb.mxu2 %vm1007_vm0, %v1277_v32 }
 0x27f   : > { %2458 = vmatpush.xpose.msk.msra.mxu3 %vm1007_vm0, %v1114_v33 }
 0x281   : > { %2467 = vmatmul.msk.f32.vlgmr.msrb.gmra.mxu2 %vm1007_vm0, %v1275_v34 }
 0x282   : > { %2459 = vmatmul.msk.f32.vlgmr.msra.gmra.mxu3 %vm1007_vm0, %v3796_v29 }
 0x283   : > { %2462 = vmatpush.xpose.msk.msrb.mxu3 %vm1007_vm0, %v1197_v30 }
 0x285   : > { %v1355_v36 = vpop.permute.xlu0 %1354 }
 0x286   : > { %v1357_v35 = vpop.permute.xlu1 %1356 }
 0x287   : > { %2470 = vmatpush.xpose.msk.msra.mxu3 %vm1007_vm0, %v1357_v35 }
 0x28a   : > { %2463 = vmatmul.msk.f32.vlgmr.msrb.gmra.mxu3 %vm1007_vm0, %v1195_v31 }
 0x292   : > { %2471 = vmatmul.msk.f32.vlgmr.msra.gmra.mxu3 %vm1007_vm0, %v1355_v36 }
 0x304   : > { %v1299_v37 = vpop.f32.mrf.mxu2 }
 0x305   : > { %v1136_v38 = vpop.f32.mrf.mxu3  ;;  %v1302_v39 = vmul.f32 0.35355338, %v1299_v37 }
 0x306   : > { %v1139_v40 = vmul.f32 0.35355338, %v1136_v38 }
 0x307   : > { %v1303_v41 = vsel %vm1140_vm4, %v1302_v39, -inf }
 0x308   : > { %1304 = vmax.xlane.f32.xlu0 %v1303_v41  ;;  %v1141_v42 = vsel %vm1140_vm4, %v1139_v40, -inf }
 0x309   : > { %1142 = vmax.xlane.f32.xlu1 %v1141_v42 }
 0x30d   : > { %v1219_v43 = vpop.f32.mrf.mxu3 }
 0x30e   : > { %v1222_v44 = vmul.f32 0.35355338, %v1219_v43 }
 0x310   : > { %v1223_v45 = vsel %vm1140_vm4, %v1222_v44, -inf }
 0x311   : > { %1224 = vmax.xlane.f32.xlu2 %v1223_v45 }
 0x315   : > { %v1379_v46 = vpop.f32.mrf.mxu3 }
 0x316   : > { %v1382_v47 = vmul.f32 0.35355338, %v1379_v46 }
 0x318   : > { %v1383_v48 = vsel %vm1140_vm4, %v1382_v47, -inf }
 0x319   : > { %1384 = vmax.xlane.f32.xlu2 %v1383_v48 }
 0x37b   : > { %v1305_v49 = vpop.xlane.xlu0 %1304 }
 0x37c   : > { %v1306_v50 = vsub.f32 %v1302_v39, %v1305_v49  ;;  %v1143_v51 = vpop.xlane.xlu1 %1142 }
 0x37d   : > { %v1144_v52 = vsub.f32 %v1139_v40, %v1143_v51 }
 0x37e   : > { %v1307_v53 = vmul.f32 1.442695, %v1306_v50 }
 0x37f   : > { %v1145_v54 = vmul.f32 1.442695, %v1144_v52 }
 0x380   : > { %2745 = vpow2.f32 %v1307_v53 }
 0x381   : > { %2747 = vpow2.f32 %v1145_v54 }
 0x384   : > { %v1225_v55 = vpop.xlane.xlu2 %1224 }
 0x385   : > { %v1226_v56 = vsub.f32 %v1222_v44, %v1225_v55 }
 0x386   : > { %v3825_v57 = vpop.eup %2745 }
 0x387   : > { %v2748_v58 = vpop.eup %2747  ;;  %v1227_v59 = vmul.f32 1.442695, %v1226_v56  ;;  %v1309_v60 = vsel %vm1140_vm4, %v3825_v57, 0.0 }
 0x388   : > { %1310 = vadd.xlane.f32.xlu0 %v1309_v60  ;;  %v1147_v61 = vsel %vm1140_vm4, %v2748_v58, 0.0 }
 0x389   : > { %2749 = vpow2.f32 %v1227_v59  ;;  %1148 = vadd.xlane.f32.xlu1 %v1147_v61 }
 0x38c   : > { %v1385_v62 = vpop.xlane.xlu2 %1384 }
 0x38d   : > { %v1386_v63 = vsub.f32 %v1382_v47, %v1385_v62 }
 0x38f   : > { %v3830_v0 = vpop.eup %2749  ;;  %v1387_v1 = vmul.f32 1.442695, %v1386_v63  ;;  %v1452_v63 = vld [vmem:[#allocation13 + $0x18] sm:$0xff] }
 0x390   : > { %v1229_v2 = vsel %vm1140_vm4, %v3830_v0, 0.0  ;;  %1472 = vmatpush.msra.mxu2 %v1452_v63 }
 0x391   : > { %2751 = vpow2.f32 %v1387_v1  ;;  %1230 = vadd.xlane.f32.xlu2 %v1229_v2  ;;  %v1450_v1 = vld [vmem:[#allocation13 + $0x8] sm:$0xff] }
 0x397   : > { %v3834_v3 = vpop.eup %2751 }
 0x398   : > { %v1389_v4 = vsel %vm1140_vm4, %v3834_v3, 0.0 }
 0x399   : > { %1390 = vadd.xlane.f32.xlu1 %v1389_v4 }
 0x39c   : > { %1247 = vrot.lane.b32.xlu0 %v3796_v29, %s3425_s29 }
 0x3a4   : > { %1407 = vrot.lane.b32.xlu0 %v3796_v29, %s3426_s21 }
 0x3a9   : > { %1165 = vrot.lane.b32.xlu2 %v3796_v29, %s3427_s3 }
 0x3b2   : > { %1327 = vrot.lane.b32.xlu1 %v3796_v29, %s3428_s23 }
 0x3fb   : > { %v3846_v6 = vpop.xlane.xlu0 %1310 }
 0x3fc   : > { %v1149_v5 = vpop.xlane.xlu1 %1148  ;;  %v1323_v47 = vand.u32 2147483648, %v3846_v6  ;;  %v1321_v49 = vand.u32 2147483647, %v3846_v6 }
 0x3fd   : > { %2753 = vrcp.f32 %v1149_v5  ;;  %v1161_v12 = vand.u32 2147483648, %v1149_v5  ;;  %v1159_v13 = vand.u32 2147483647, %v1149_v5  ;;  %vm1155_vm6 = vweird.f32 %v1149_v5 }
 0x3fe   : > { %2755 = vrcp.f32 %v3846_v6  ;;  %v1324_v54 = vor.u32 1.1754944e-38, %v1323_v47 }
 0x3ff   : > { %v1162_v17 = vor.u32 1.1754944e-38, %v1161_v12  ;;  %vm1160_vm9 = vcmp.eq.f32.partialorder %v1159_v13, 8.507059e+37  ;;  %v2738_v12 = vld [vmem:[#allocation15] ss:$0 sm:$0xff] }
 0x403   : > { %v2754_v7 = vpop.eup %2753 }
 0x404   : > { %v1151_v8 = vmul.f32 %v2754_v7, %v1149_v5  ;;  %v1231_v9 = vpop.xlane.xlu2 %1230  ;;  %vm1156_vm5 = vweird.f32 %v2754_v7  ;;  %v3849_v14 = vpop.eup %2755 }
 0x405   : > { %2757 = vrcp.f32 %v1231_v9  ;;  %vm1157_vm8 = vmor %vm1155_vm6, %vm1156_vm5  ;;  %v1313_v22 = vmul.f32 %v3849_v14, %v3846_v6  ;;  %v1243_v27 = vand.u32 2147483648, %v1231_v9  ;;  %v1241_v30 = vand.u32 2147483647, %v1231_v9 }
 0x406   : > { %v1152_v10 = vsub.f32 1.0, %v1151_v8  ;;  %vm1237_vm12 = vweird.f32 %v1231_v9  ;;  %vm1318_vm5 = vweird.f32 %v3849_v14  ;;  %v1486_v8 = vld [vmem:[#allocation16 + $0x18] sm:$0xff] }
 0x407   : > { %v1314_v31 = vsub.f32 1.0, %v1313_v22  ;;  %v1244_v34 = vor.u32 1.1754944e-38, %v1243_v27  ;;  %vm1242_vm14 = vcmp.eq.f32.partialorder %v1241_v30, 8.507059e+37 }
 0x408   : > { %v1153_v11 = vmul.f32 %v2754_v7, %v1152_v10  ;;  %v1484_v10 = vld [vmem:[#allocation16 + $0x8] sm:$0xff] }
 0x409   : > { %v1315_v38 = vmul.f32 %v3849_v14, %v1314_v31 }
 0x40a   : > { %v1154_v15 = vadd.f32 %v2754_v7, %v1153_v11  ;;  %v1483_v11 = vld [vmem:[#allocation16] sm:$0xff] }
 0x40b   : > { %v2758_v16 = vpop.eup %2757  ;;  %v1316_v45 = vadd.f32 %v3849_v14, %v1315_v38  ;;  %v1590_v38 = vld [vmem:[#allocation21 + $0x10] sm:$0xff] }
 0x40c   : > { %v1233_v18 = vmul.f32 %v2758_v16, %v1231_v9  ;;  %v1166_v19 = vpop.permute.xlu2 %1165  ;;  %v1391_v20 = vpop.xlane.xlu1 %1390  ;;  %v1158_v21 = vsel %vm1157_vm8, %v2754_v7, %v1154_v15  ;;  %vm1238_vm11 = vweird.f32 %v2758_v16  ;;  %v1485_v9 = vld [vmem:[#allocation16 + $0x10] sm:$0xff] }
 0x40d   : > { %2759 = vrcp.f32 %v1391_v20  ;;  %2460 = vmatpush.msk.msrb.mxu0 %vm1171_vm7, %v1166_v19  ;;  %v1163_v25 = vsel %vm1160_vm9, %v1162_v17, %v1158_v21  ;;  %vm1239_vm13 = vmor %vm1237_vm12, %vm1238_vm11  ;;  %v1403_v42 = vand.u32 2147483648, %v1391_v20  ;;  %v1401_v44 = vand.u32 2147483647, %v1391_v20  ;;  %v1524_v19 = vld [vmem:[#allocation19 + $0x10] sm:$0xff]  ;;  %v2739_v21 = vld [vmem:[#allocation18] ss:$0 sm:$0xff] }
 0x40e   : > { %v1234_v23 = vsub.f32 1.0, %v1233_v18  ;;  %v1248_v24 = vpop.permute.xlu0 %1247  ;;  %v1164_v28 = vmul.f32 %v2748_v58, %v1163_v25  ;;  %vm1397_vm6 = vweird.f32 %v1391_v20  ;;  %vm1317_vm9 = vweird.f32 %v3846_v6  ;;  %v1525_v18 = vld [vmem:[#allocation19 + $0x18] sm:$0xff]  ;;  %v1522_v25 = vld [vmem:[#allocation19] sm:$0xff] }
 0x40f   : > { %2464 = vmatpush.msk.msrb.mxu1 %vm1171_vm7, %v1248_v24  ;;  %v1404_v48 = vor.u32 1.1754944e-38, %v1403_v42  ;;  %vm1402_vm11 = vcmp.eq.f32.partialorder %v1401_v44, 8.507059e+37  ;;  %vm1319_vm12 = vmor %vm1317_vm9, %vm1318_vm5  ;;  %1541 = vmatpush.msrb.mxu3 %v1525_v18 }
 0x410   : > { %v1235_v29 = vmul.f32 %v2758_v16, %v1234_v23  ;;  %2461 = vmatmul.msk.f32.vlgmr.msrb.gmra.mxu0 %vm1167_vm10, %v1164_v28  ;;  %v1320_v52 = vsel %vm1319_vm12, %v3849_v14, %v1316_v45  ;;  %v1480_v14 = vstv %s2455_s5 }
 0x411   : > { %1542 = vmatpush.msrb.mxu3 %v1524_v19 }
 0x412   : > { %v1236_v32 = vadd.f32 %v2758_v16, %v1235_v29 }
 0x413   : > { %v2760_v33 = vpop.eup %2759 }
 0x414   : > { %v1393_v35 = vmul.f32 %v2760_v33, %v1391_v20  ;;  %v1240_v36 = vsel %vm1239_vm13, %v2758_v16, %v1236_v32  ;;  %vm1398_vm15 = vweird.f32 %v2760_v33  ;;  %vm1322_vm13 = vcmp.eq.f32.partialorder %v1321_v49, 8.507059e+37  ;;  %v1523_v20 = vld [vmem:[#allocation19 + $0x8] sm:$0xff] }
 0x415   : > { %v1245_v37 = vsel %vm1242_vm14, %v1244_v34, %v1240_v36  ;;  %vm1399_vm8 = vmor %vm1397_vm6, %vm1398_vm15  ;;  %v1325_v55 = vsel %vm1322_vm13, %v1324_v54, %v1320_v52  ;;  %1543 = vmatpush.msrb.mxu3 %v1523_v20  ;;  %v1588_v54 = vld [vmem:[#allocation21] sm:$0xff] }
 0x416   : > { %v1394_v39 = vsub.f32 1.0, %v1393_v35  ;;  %v1408_v40 = vpop.permute.xlu0 %1407  ;;  %v1246_v41 = vmul.f32 %v3830_v0, %v1245_v37  ;;  %v1326_v58 = vmul.f32 %v3825_v57, %v1325_v55  ;;  %v1451_v0 = vld [vmem:[#allocation13 + $0x10] sm:$0xff]  ;;  %v1449_v57 = vld [vmem:[#allocation13] sm:$0xff] }
 0x417   : > { %2472 = vmatpush.msk.msra.mxu1 %vm1171_vm7, %v1408_v40  ;;  %1473 = vmatpush.msra.mxu2 %v1451_v0  ;;  %v1591_v37 = vld [vmem:[#allocation21 + $0x18] sm:$0xff] }
 0x418   : > { %v1395_v43 = vmul.f32 %v2760_v33, %v1394_v39  ;;  %2465 = vmatmul.msk.f32.vlgmr.msrb.gmra.mxu1 %vm1167_vm10, %v1246_v41  ;;  %1544 = vmatpush.msrb.mxu3 %v1522_v25  ;;  %v1589_v39 = vld [vmem:[#allocation21 + $0x8] sm:$0xff] }
 0x419   : > { %1474 = vmatpush.msra.mxu2 %v1450_v1  ;;  %1611 = vmatpush.msrb.mxu1 %v1591_v37 }
 0x41a   : > { %v1396_v46 = vadd.f32 %v2760_v33, %v1395_v43 }
 0x41b   : > { %1475 = vmatpush.msra.mxu2 %v1449_v57  ;;  %1612 = vmatpush.msrb.mxu1 %v1590_v38 }
 0x41c   : > { %v1400_v50 = vsel %vm1399_vm8, %v2760_v33, %v1396_v46 }
 0x41d   : > { %v1405_v51 = vsel %vm1402_vm11, %v1404_v48, %v1400_v50  ;;  %1613 = vmatpush.msrb.mxu1 %v1589_v39  ;;  %v1579_v50 = vstv %s2456_s28 }
 0x41e   : > { %v1406_v53 = vmul.f32 %v3834_v3, %v1405_v51 }
 0x41f   : > { %1614 = vmatpush.msrb.mxu1 %v1588_v54 }
 0x420   : > { %2473 = vmatmul.msk.f32.vlgmr.msra.gmra.mxu1 %vm1167_vm10, %v1406_v53 }
 0x424   : > { %v1328_v56 = vpop.permute.xlu1 %1327 }
 0x425   : > { %2468 = vmatpush.msk.msra.mxu0 %vm1171_vm7, %v1328_v56 }
 0x426   : > { %2469 = vmatmul.msk.f32.vlgmr.msra.gmra.mxu0 %vm1167_vm10, %v1326_v58  ;;  %v2740_v58 = vld [vmem:[#allocation22] ss:$0 sm:$0xff] }
 0x427   : > { %1506 = vmatpush.msrb.mxu0 %v1486_v8 }
 0x429   : > { %1507 = vmatpush.msrb.mxu0 %v1485_v9 }
 0x42b   : > { %1508 = vmatpush.msrb.mxu0 %v1484_v10 }
 0x42d   : > { %1509 = vmatpush.msrb.mxu0 %v1483_v11 }
 0x48d   : > { %v1191_v60 = vpop.f32.mrf.mxu0 }
 0x495   : > { %v1271_v59 = vpop.f32.mrf.mxu1 }
 0x496   : > { %1435 = vrot.lane.b32.xlu2 %v1271_v59, %s3415_s12 }
 0x49d   : > { %v1431_v61 = vpop.f32.mrf.mxu1 }
 0x49e   : > { %1443 = vrot.lane.b32.xlu0 %v1431_v61, %s3416_s25 }
 0x4a3   : > { %v1351_v62 = vpop.f32.mrf.mxu0 }
 0x4a4   : > { %1439 = vrot.lane.b32.xlu1 %v1351_v62, %s3417_s0 }
 0x4f0   : > { %v1436_v2 = vpop.permute.xlu2 %1435 }
 0x4f1   : > { %v1446_v3 = vsel %vm1007_vm0, %v1191_v60, %v1436_v2 }
 0x510   : > { %v1444_v5 = vpop.permute.xlu0 %1443 }
 0x516   : > { %v1440_v4 = vpop.permute.xlu1 %1439 }
 0x517   : > { %v1447_v6 = vsel %vm1009_vm2, %v1446_v3, %v1440_v4 }
 0x518   : > { %v1448_v7 = vsel %vm1011_vm3, %v1447_v6, %v1444_v5 }
 0x519   : > { %2474 = vmatmul.msk.f32.vlgmr.msra.gmra.mxu2 %vm1051_vm1, %v1448_v7 }
 0x59c   : > { %v1477_v13 = vpop.f32.mrf.mxu2 }
 0x59d   : > { %v1478_v15 = vadd.f32 %v2738_v12, %v1477_v13 }
 0x59f   : > { %v1481_v16 = vmul.f32 %v1480_v14, %v1478_v15 }
 0x5a1   : > { %v3879_v17 = vadd.f32 %v1481_v16, %v3792_v26 }
 0x5a3   : > { %2475 = vmatmul.msk.f32.vlgmr.msrb.gmra.mxu0 %vm1051_vm1, %v3879_v17 }
 0x620   : > { %v1511_v22 = vpop.f32.mrf.mxu0 }
 0x621   : > { %v1512_v23 = vadd.f32 %v2739_v21, %v1511_v22 }
 0x623   : > { %2761 = vtanh.f32 %v1512_v23  ;;  %v1514_v26 = vmax.f32 %v1512_v23, 0.0 }
 0x625   : > { %2763 = vtanh.f32 %v1514_v26 }
 0x629   : > { %v2762_v24 = vpop.eup %2761 }
 0x62a   : > { %1518 = vrot.lane.b32.xlu2 %v2762_v24, %s3420_s27 }
 0x62b   : > { %v2764_v27 = vpop.eup %2763 }
 0x684   : > { %v1519_v28 = vpop.permute.xlu2 %1518 }
 0x685   : > { %v1521_v29 = vmul.f32 %v2764_v27, %v1519_v28 }
 0x687   : > { %2476 = vmatmul.msk.f32.vlgmr.msrb.gmra.mxu3 %vm1051_vm1, %v1521_v29 }
 0x70a   : > { %v1546_v30 = vpop.f32.mrf.mxu3 }
 0x70b   : > { %1550 = vrot.lane.b32.xlu1 %v1546_v30, %s3427_s3 }
 0x77d   : > { %v1551_v31 = vpop.permute.xlu1 %1550 }
 0x77e   : > { %v1553_v32 = vadd.f32 %v1551_v31, %v1512_v23 }
 0x780   : > { %2765 = vtanh.f32 %v1553_v32  ;;  %v2477_v34 = vmul.f32 -1.442695, %v1553_v32 }
 0x782   : > { %2767 = vpow2.f32 %v2477_v34 }
 0x786   : > { %v2766_v33 = vpop.eup %2765 }
 0x787   : > { %1575 = vrot.lane.b32.xlu0 %v2766_v33, %s3429_s1 }
 0x788   : > { %v2768_v35 = vpop.eup %2767 }
 0x789   : > { %v1558_v36 = vadd.f32 1.0, %v2768_v35 }
 0x78b   : > { %2769 = vrcp.f32 %v1558_v36  ;;  %v1570_v45 = vand.u32 2147483648, %v1558_v36  ;;  %vm1564_vm15 = vweird.f32 %v1558_v36  ;;  %v1568_v46 = vand.u32 2147483647, %v1558_v36 }
 0x78d   : > { %v1571_v48 = vor.u32 1.1754944e-38, %v1570_v45  ;;  %vm1569_vm6 = vcmp.eq.f32.partialorder %v1568_v46, 8.507059e+37 }
 0x791   : > { %v2770_v40 = vpop.eup %2769 }
 0x792   : > { %v1560_v41 = vmul.f32 %v2770_v40, %v1558_v36  ;;  %vm1565_vm14 = vweird.f32 %v2770_v40 }
 0x793   : > { %vm1566_vm5 = vmor %vm1564_vm15, %vm1565_vm14 }
 0x794   : > { %v1561_v42 = vsub.f32 1.0, %v1560_v41 }
 0x796   : > { %v1562_v43 = vmul.f32 %v2770_v40, %v1561_v42 }
 0x798   : > { %v1563_v44 = vadd.f32 %v2770_v40, %v1562_v43 }
 0x79a   : > { %v1567_v47 = vsel %vm1566_vm5, %v2770_v40, %v1563_v44 }
 0x79b   : > { %v1572_v49 = vsel %vm1569_vm6, %v1571_v48, %v1567_v47 }
 0x7f9   : > { %v1576_v51 = vpop.permute.xlu0 %1575 }
 0x7fa   : > { %v1578_v52 = vmul.f32 %v1576_v51, %v1572_v49 }
 0x7fc   : > { %v1580_v53 = vmul.f32 %v1579_v50, %v1578_v52 }
 0x7fe   : > { %1582 = vrot.lane.b32.xlu2 %v1580_v53, %s3429_s1 }
 0x858   : > { %v1583_v55 = vpop.permute.xlu2 %1582 }
 0x859   : > { %v3889_v56 = vadd.f32 %v1583_v55, %v3879_v17 }
 0x85b   : > { %2480 = vmatmul.msk.f32.vlgmr.msrb.gmra.mxu1 %vm1051_vm1, %v3889_v56 }
 0x8d8   : > { %v1616_v59 = vpop.f32.mrf.mxu1 }
 0x8d9   : > { %v3893_v60 = vadd.f32 %v2740_v58, %v1616_v59 }
 0x8db   : > { %1698 = vrot.lane.b32.xlu2 %v3893_v60, %s3422_s30  ;;  %1700 = vrot.lane.b32.xlu0 %v3893_v60, %s3419_s24 }
 0x8dc   : > { %1620 = vrot.lane.b32.xlu1 %v3893_v60, %s3420_s27 }
 0x8e3   : > { %1778 = vrot.lane.b32.xlu2 %v3893_v60, %s3424_s10  ;;  %1860 = vrot.lane.b32.xlu0 %v3893_v60, %s3423_s2  ;;  %s4116_s2 = sld [smem:[#allocation61_spill]] }
 0x8e4   : > { %1780 = vrot.lane.b32.xlu1 %v3893_v60, %s3418_s8  ;;  %s2505_s8 = sshll.u32 %s3576_s6, 2 }
 0x8ec   : > { %1858 = vrot.lane.b32.xlu1 %v3893_v60, %s3421_s4 }
 0x935   : > { %v1699_v63 = vpop.permute.xlu2 %1698 }
 0x93d   : > { %v1779_v57 = vpop.permute.xlu2 %1778 }
 0x94d   : > { %v1701_v61 = vpop.permute.xlu0 %1700 }
 0x94e   : > { %v1621_v62 = vpop.permute.xlu1 %1620  ;;  %2485 = vmatpush.xpose.msk.msra.mxu3 %vm1007_vm0, %v1701_v61 }
 0x94f   : > { %2481 = vmatpush.xpose.msk.msrb.mxu2 %vm1007_vm0, %v1621_v62 }
 0x951   : > { %2486 = vmatmul.msk.f32.vlgmr.msra.gmra.mxu3 %vm1007_vm0, %v1699_v63 }
 0x952   : > { %2482 = vmatmul.msk.f32.vlgmr.msrb.gmra.mxu2 %vm1007_vm0, %v3893_v60 }
 0x955   : > { %v1861_v0 = vpop.permute.xlu0 %1860 }
 0x956   : > { %v1781_v1 = vpop.permute.xlu1 %1780  ;;  %2493 = vmatpush.xpose.msk.msrb.mxu3 %vm1007_vm0, %v1861_v0 }
 0x957   : > { %2489 = vmatpush.xpose.msk.msra.mxu2 %vm1007_vm0, %v1781_v1 }
 0x95a   : > { %2490 = vmatmul.msk.f32.vlgmr.msra.gmra.mxu2 %vm1007_vm0, %v1779_v57 }
 0x95e   : > { %v1859_v2 = vpop.permute.xlu1 %1858 }
 0x95f   : > { %2494 = vmatmul.msk.f32.vlgmr.msrb.gmra.mxu3 %vm1007_vm0, %v1859_v2 }
 0x9d4   : > { %v1723_v3 = vpop.f32.mrf.mxu3 }
 0x9d5   : > { %v1643_v4 = vpop.f32.mrf.mxu2  ;;  %v1726_v5 = vmul.f32 0.35355338, %v1723_v3 }
 0x9d6   : > { %v1646_v6 = vmul.f32 0.35355338, %v1643_v4 }
 0x9d7   : > { %v1727_v7 = vsel %vm1140_vm4, %v1726_v5, -inf }
 0x9d8   : > { %1728 = vmax.xlane.f32.xlu2 %v1727_v7  ;;  %v1647_v8 = vsel %vm1140_vm4, %v1646_v6, -inf }
 0x9d9   : > { %1648 = vmax.xlane.f32.xlu0 %v1647_v8 }
 0x9dd   : > { %v1803_v9 = vpop.f32.mrf.mxu2 }
 0x9de   : > { %v1806_v10 = vmul.f32 0.35355338, %v1803_v9 }
 0x9e0   : > { %v1807_v11 = vsel %vm1140_vm4, %v1806_v10, -inf }
 0x9e1   : > { %1808 = vmax.xlane.f32.xlu1 %v1807_v11 }
 0x9e2   : > { %v1883_v12 = vpop.f32.mrf.mxu3 }
 0x9e3   : > { %v1886_v13 = vmul.f32 0.35355338, %v1883_v12 }
 0x9e5   : > { %v1887_v14 = vsel %vm1140_vm4, %v1886_v13, -inf }
 0x9e6   : > { %1888 = vmax.xlane.f32.xlu0 %v1887_v14 }
 0x9fa   : > { %1751 = vrot.lane.b32.xlu0 %v3893_v60, %s3425_s29  ;;  %s2479_s29 = sld [smem:[#allocation2 + $0x4]] }
 0xa4b   : > { %v1729_v15 = vpop.xlane.xlu2 %1728 }
 0xa4c   : > { %v1730_v16 = vsub.f32 %v1726_v5, %v1729_v15  ;;  %v1649_v17 = vpop.xlane.xlu0 %1648 }
 0xa4d   : > { %v1650_v18 = vsub.f32 %v1646_v6, %v1649_v17 }
 0xa4e   : > { %v1731_v19 = vmul.f32 1.442695, %v1730_v16 }
 0xa4f   : > { %v1651_v20 = vmul.f32 1.442695, %v1650_v18 }
 0xa50   : > { %2771 = vpow2.f32 %v1731_v19 }
 0xa51   : > { %2773 = vpow2.f32 %v1651_v20 }
 0xa54   : > { %v1809_v21 = vpop.xlane.xlu1 %1808 }
 0xa55   : > { %v1810_v22 = vsub.f32 %v1806_v10, %v1809_v21 }
 0xa56   : > { %v2772_v23 = vpop.eup %2771 }
 0xa57   : > { %v3924_v24 = vpop.eup %2773  ;;  %v1811_v25 = vmul.f32 1.442695, %v1810_v22  ;;  %v1733_v26 = vsel %vm1140_vm4, %v2772_v23, 0.0 }
 0xa58   : > { %v1653_v27 = vsel %vm1140_vm4, %v3924_v24, 0.0  ;;  %1734 = vadd.xlane.f32.xlu1 %v1733_v26 }
 0xa59   : > { %2775 = vpow2.f32 %v1811_v25  ;;  %1654 = vadd.xlane.f32.xlu2 %v1653_v27  ;;  %v1889_v28 = vpop.xlane.xlu0 %1888 }
 0xa5a   : > { %v1890_v29 = vsub.f32 %v1886_v13, %v1889_v28 }
 0xa5c   : > { %v1891_v30 = vmul.f32 1.442695, %v1890_v29  ;;  %v1956_v29 = vld [vmem:[#allocation24 + $0x18] sm:$0xff] }
 0xa5d   : > { %1976 = vmatpush.msrb.mxu2 %v1956_v29 }
 0xa5e   : > { %2777 = vpow2.f32 %v1891_v30  ;;  %v1955_v30 = vld [vmem:[#allocation24 + $0x10] sm:$0xff] }
 0xa5f   : > { %v3929_v31 = vpop.eup %2775  ;;  %1977 = vmatpush.msrb.mxu2 %v1955_v30 }
 0xa60   : > { %v1813_v32 = vsel %vm1140_vm4, %v3929_v31, 0.0 }
 0xa61   : > { %1814 = vadd.xlane.f32.xlu0 %v1813_v32  ;;  %v1954_v32 = vld [vmem:[#allocation24 + $0x8] sm:$0xff] }
 0xa62   : > { %1978 = vmatpush.msrb.mxu2 %v1954_v32 }
 0xa64   : > { %v3933_v33 = vpop.eup %2777 }
 0xa65   : > { %v1893_v34 = vsel %vm1140_vm4, %v3933_v33, 0.0 }
 0xa66   : > { %1894 = vadd.xlane.f32.xlu2 %v1893_v34 }
 0xa6c   : > { %v1752_v35 = vpop.permute.xlu0 %1751 }
 0xa6d   : > { %2487 = vmatpush.msk.msra.mxu1 %vm1171_vm7, %v1752_v35 }
 0xa71   : > { %1671 = vrot.lane.b32.xlu1 %v3893_v60, %s3427_s3 }
 0xa75   : > { %1911 = vrot.lane.b32.xlu0 %v3893_v60, %s3426_s21 }
 0xa7e   : > { %1831 = vrot.lane.b32.xlu2 %v3893_v60, %s3428_s23 }
 0xacb   : > { %v1735_v36 = vpop.xlane.xlu1 %1734 }
 0xacc   : > { %v1655_v37 = vpop.xlane.xlu2 %1654  ;;  %2779 = vrcp.f32 %v1735_v36  ;;  %v1747_v45 = vand.u32 2147483648, %v1735_v36  ;;  %v1745_v47 = vand.u32 2147483647, %v1735_v36  ;;  %vm1741_vm9 = vweird.f32 %v1735_v36 }
 0xacd   : > { %2781 = vrcp.f32 %v1655_v37  ;;  %v1667_v52 = vand.u32 2147483648, %v1655_v37  ;;  %vm1661_vm12 = vweird.f32 %v1655_v37  ;;  %v1665_v55 = vand.u32 2147483647, %v1655_v37 }
 0xace   : > { %v1748_v53 = vor.u32 1.1754944e-38, %v1747_v45  ;;  %vm1746_vm13 = vcmp.eq.f32.partialorder %v1745_v47, 8.507059e+37 }
 0xacf   : > { %v1668_v63 = vor.u32 1.1754944e-38, %v1667_v52  ;;  %vm1666_vm15 = vcmp.eq.f32.partialorder %v1665_v55, 8.507059e+37  ;;  %v2742_v52 = vld [vmem:[%s4057_s18] ss:$0 sm:$0xff] }
 0xad2   : > { %v2780_v38 = vpop.eup %2779 }
 0xad3   : > { %v2782_v39 = vpop.eup %2781  ;;  %v1737_v40 = vmul.f32 %v2780_v38, %v1735_v36  ;;  %vm1742_vm4 = vweird.f32 %v2780_v38 }
 0xad4   : > { %v1657_v41 = vmul.f32 %v2782_v39, %v1655_v37  ;;  %v1815_v42 = vpop.xlane.xlu0 %1814  ;;  %vm1662_vm8 = vweird.f32 %v2782_v39  ;;  %vm1743_vm11 = vmor %vm1741_vm9, %vm1742_vm4 }
 0xad5   : > { %v1738_v43 = vsub.f32 1.0, %v1737_v40  ;;  %2783 = vrcp.f32 %v1815_v42  ;;  %vm1663_vm14 = vmor %vm1661_vm12, %vm1662_vm8  ;;  %v1827_v5 = vand.u32 2147483648, %v1815_v42  ;;  %vm1821_vm6 = vweird.f32 %v1815_v42  ;;  %v1989_v40 = vld [vmem:[#allocation27 + $0x10] sm:$0xff] }
 0xad6   : > { %v1658_v44 = vsub.f32 1.0, %v1657_v41  ;;  %v1825_v6 = vand.u32 2147483647, %v1815_v42  ;;  %v1988_v41 = vld [vmem:[#allocation27 + $0x8] sm:$0xff] }
 0xad7   : > { %v1739_v46 = vmul.f32 %v2780_v38, %v1738_v43  ;;  %v1828_v16 = vor.u32 1.1754944e-38, %v1827_v5  ;;  %v2741_v43 = vld [vmem:[#allocation25] ss:$0 sm:$0xff] }
 0xad8   : > { %v1659_v48 = vmul.f32 %v2782_v39, %v1658_v44  ;;  %vm1826_vm9 = vcmp.eq.f32.partialorder %v1825_v6, 8.507059e+37  ;;  %v2107_v5 = vld [vmem:[%s4059_s20 + $0x10] sm:$0xff] }
 0xad9   : > { %v1740_v49 = vadd.f32 %v2780_v38, %v1739_v46  ;;  %v1895_v50 = vpop.xlane.xlu2 %1894 }
 0xada   : > { %v1660_v51 = vadd.f32 %v2782_v39, %v1659_v48  ;;  %2785 = vrcp.f32 %v1895_v50  ;;  %v1907_v11 = vand.u32 2147483648, %v1895_v50  ;;  %v1905_v14 = vand.u32 2147483647, %v1895_v50 }
 0xadb   : > { %v2784_v54 = vpop.eup %2783  ;;  %v1744_v58 = vsel %vm1743_vm11, %v2780_v38, %v1740_v49  ;;  %vm1901_vm11 = vweird.f32 %v1895_v50  ;;  %v2029_v49 = vld [vmem:[#allocation28 + $0x18] sm:$0xff] }
 0xadc   : > { %v1749_v59 = vsel %vm1746_vm13, %v1748_v53, %v1744_v58  ;;  %v1817_v60 = vmul.f32 %v2784_v54, %v1815_v42  ;;  %v1664_v61 = vsel %vm1663_vm14, %v2782_v39, %v1660_v51  ;;  %vm1822_vm5 = vweird.f32 %v2784_v54  ;;  %v1990_v39 = vld [vmem:[#allocation27 + $0x18] sm:$0xff]  ;;  %v1987_v42 = vld [vmem:[#allocation27] sm:$0xff]  ;;  %2045 = vmatpush.msra.mxu3 %v2029_v49  ;;  %v2027_v51 = vld [vmem:[#allocation28 + $0x8] sm:$0xff] }
 0xadd   : > { %v1750_v62 = vmul.f32 %v2772_v23, %v1749_v59  ;;  %v1669_v57 = vsel %vm1666_vm15, %v1668_v63, %v1664_v61  ;;  %vm3946_vm4 = vmor %vm1821_vm6, %vm1822_vm5  ;;  %v1908_v20 = vor.u32 1.1754944e-38, %v1907_v11  ;;  %vm1906_vm13 = vcmp.eq.f32.partialorder %v1905_v14, 8.507059e+37 }
 0xade   : > { %v1818_v0 = vsub.f32 1.0, %v1817_v60  ;;  %v1670_v9 = vmul.f32 %v3924_v24, %v1669_v57 }
 0xadf   : > { %2488 = vmatmul.msk.f32.vlgmr.msra.gmra.mxu1 %vm1167_vm10, %v1750_v62 }
 0xae0   : > { %v2786_v1 = vpop.eup %2785  ;;  %v1819_v2 = vmul.f32 %v2784_v54, %v1818_v0 }
 0xae1   : > { %v1897_v3 = vmul.f32 %v2786_v1, %v1895_v50  ;;  %vm1902_vm8 = vweird.f32 %v2786_v1  ;;  %v1832_v15 = vpop.permute.xlu2 %1831  ;;  %v2028_v50 = vld [vmem:[#allocation28 + $0x10] sm:$0xff] }
 0xae2   : > { %v1820_v4 = vadd.f32 %v2784_v54, %v1819_v2  ;;  %vm1903_vm12 = vmor %vm1901_vm11, %vm1902_vm8  ;;  %2046 = vmatpush.msra.mxu3 %v2028_v50 }
 0xae3   : > { %v1898_v7 = vsub.f32 1.0, %v1897_v3  ;;  %v1672_v8 = vpop.permute.xlu1 %1671 }
 0xae4   : > { %2483 = vmatpush.msk.msra.mxu0 %vm1171_vm7, %v1672_v8  ;;  %v1824_v12 = vsel %vm3946_vm4, %v2784_v54, %v1820_v4  ;;  %2047 = vmatpush.msra.mxu3 %v2027_v51  ;;  %v2108_v4 = vld [vmem:[%s4059_s20 + $0x18] sm:$0xff] }
 0xae5   : > { %v1899_v13 = vmul.f32 %v2786_v1, %v1898_v7  ;;  %2484 = vmatmul.msk.f32.vlgmr.msra.gmra.mxu0 %vm1167_vm10, %v1670_v9  ;;  %v1829_v19 = vsel %vm1826_vm9, %v1828_v16, %v1824_v12  ;;  %v2083_v16 = vstv %s2479_s29 }
 0xae6   : > { %2491 = vmatpush.msk.msrb.mxu0 %vm1171_vm7, %v1832_v15  ;;  %v1830_v24 = vmul.f32 %v3929_v31, %v1829_v19  ;;  %v1953_v31 = vld [vmem:[#allocation24] sm:$0xff] }
 0xae7   : > { %v1900_v17 = vadd.f32 %v2786_v1, %v1899_v13  ;;  %v1912_v18 = vpop.permute.xlu0 %1911  ;;  %1979 = vmatpush.msrb.mxu2 %v1953_v31 }
 0xae8   : > { %2495 = vmatpush.msk.msrb.mxu1 %vm1171_vm7, %v1912_v18  ;;  %2010 = vmatpush.msra.mxu0 %v1990_v39 }
 0xae9   : > { %v1904_v21 = vsel %vm1903_vm12, %v2786_v1, %v1900_v17 }
 0xaea   : > { %v1909_v22 = vsel %vm1906_vm13, %v1908_v20, %v1904_v21  ;;  %2011 = vmatpush.msra.mxu0 %v1989_v40  ;;  %2128 = vmatpush.msra.mxu1 %v2108_v4  ;;  %v2106_v20 = vld [vmem:[%s4059_s20 + $0x8] sm:$0xff]  ;;  %v2105_v21 = vld [vmem:[%s4059_s20] sm:$0xff] }
 0xaeb   : > { %v1910_v23 = vmul.f32 %v3933_v33, %v1909_v22 }
 0xaec   : > { %2012 = vmatpush.msra.mxu0 %v1988_v41  ;;  %2129 = vmatpush.msra.mxu1 %v2107_v5 }
 0xaed   : > { %2496 = vmatmul.msk.f32.vlgmr.msrb.gmra.mxu1 %vm1167_vm10, %v1910_v23  ;;  %2492 = vmatmul.msk.f32.vlgmr.msrb.gmra.mxu0 %vm1167_vm10, %v1830_v24 }
 0xaee   : > { %2013 = vmatpush.msra.mxu0 %v1987_v42  ;;  %2130 = vmatpush.msra.mxu1 %v2106_v20 }
 0xaf0   : > { %2131 = vmatpush.msra.mxu1 %v2105_v21 }
 0xb5c   : > { %v1775_v25 = vpop.f32.mrf.mxu1 }
 0xb5d   : > { %1939 = vrot.lane.b32.xlu1 %v1775_v25, %s3415_s12  ;;  %s2478_s12 = sld [smem:[#allocation2 + $0x3]]  ;;  %v2137_v25 = vld [vmem:[%s4061_s22] sm:$0xff] }
 0xb5e   : > { %2160 = vmatpush.msra.mxu2 %v2137_v25 }
 0xb62   : > { %v1695_v26 = vpop.f32.mrf.mxu0 }
 0xb63   : > { %v1984_v45 = vstv %s2478_s12 }
 0xb6a   : > { %v1935_v27 = vpop.f32.mrf.mxu1  ;;  %v1855_v28 = vpop.f32.mrf.mxu0 }
 0xb6b   : > { %1947 = vrot.lane.b32.xlu0 %v1935_v27, %s3416_s25  ;;  %1943 = vrot.lane.b32.xlu2 %v1855_v28, %s3417_s0  ;;  %s4115_s0 = sld [smem:[#allocation60_spill]] }
 0xbc5   : > { %v1944_v35 = vpop.permute.xlu2 %1943 }
 0xbcf   : > { %v1940_v33 = vpop.permute.xlu1 %1939 }
 0xbd0   : > { %v1950_v34 = vsel %vm1007_vm0, %v1695_v26, %v1940_v33  ;;  %v2743_v26 = vld [vmem:[%s4115_s0] ss:$0 sm:$0xff] }
 0xbd1   : > { %v1951_v37 = vsel %vm1009_vm2, %v1950_v34, %v1944_v35  ;;  %v2744_v34 = vld [vmem:[%s4116_s2] ss:$0 sm:$0xff] }
 0xbdd   : > { %v1948_v36 = vpop.permute.xlu0 %1947 }
 0xbde   : > { %v1952_v38 = vsel %vm1011_vm3, %v1951_v37, %v1948_v36 }
 0xbdf   : > { %2497 = vmatmul.msk.f32.vlgmr.msrb.gmra.mxu2 %vm1051_vm1, %v1952_v38 }
 0xc62   : > { %v1981_v44 = vpop.f32.mrf.mxu2 }
 0xc63   : > { %v1982_v46 = vadd.f32 %v2741_v43, %v1981_v44 }
 0xc65   : > { %v1985_v47 = vmul.f32 %v1984_v45, %v1982_v46 }
 0xc67   : > { %v3968_v48 = vadd.f32 %v1985_v47, %v3889_v56  ;;  %v2026_v56 = vld [vmem:[#allocation28] sm:$0xff] }
 0xc68   : > { %2048 = vmatpush.msra.mxu3 %v2026_v56 }
 0xc69   : > { %2498 = vmatmul.msk.f32.vlgmr.msra.gmra.mxu0 %vm1051_vm1, %v3968_v48 }
 0xce6   : > { %v2015_v53 = vpop.f32.mrf.mxu0 }
 0xce7   : > { %v2016_v54 = vadd.f32 %v2742_v52, %v2015_v53 }
 0xce9   : > { %2787 = vtanh.f32 %v2016_v54  ;;  %v2018_v58 = vmax.f32 %v2016_v54, 0.0 }
 0xceb   : > { %2789 = vtanh.f32 %v2018_v58 }
 0xcef   : > { %v2788_v55 = vpop.eup %2787 }
 0xcf0   : > { %2022 = vrot.lane.b32.xlu1 %v2788_v55, %s3420_s27 }
 0xcf1   : > { %v2790_v59 = vpop.eup %2789 }
 0xd62   : > { %v2023_v60 = vpop.permute.xlu1 %2022 }
 0xd63   : > { %v2025_v61 = vmul.f32 %v2790_v59, %v2023_v60 }
 0xd65   : > { %2499 = vmatmul.msk.f32.vlgmr.msra.gmra.mxu3 %vm1051_vm1, %v2025_v61 }
 0xde8   : > { %v2050_v62 = vpop.f32.mrf.mxu3 }
 0xde9   : > { %2054 = vrot.lane.b32.xlu2 %v2050_v62, %s3427_s3  ;;  %s4117_s3 = sld [smem:[#allocation62_spill]] }
 0xdef   : > { %s2182_s23 = scalar_lea.hbm %s4117_s3, %s2505_s8 }
 0xdf0   : > { %s2186_s12 = sshll.u32 %s2182_s23, 4  ;;  %s2187_s12 = int_to_ptr.hbm [resolvable:$true] %s2186_s12 }
 0xdf1   : > { %s3306_s25 = sshra.s32 %s2187_s12, 4  ;;  %s3307_s25 = int_to_ptr.hbm [resolvable:$true] %s3306_s25 }
 0xdf2   : > { %s3308_s0 = scalar_lea.hbm %s3307_s25, 4  ;;  %p3313_p3 = scmp.lt.s32.totalorder %s3307_s25, %s4117_s3 }
 0xdf3   : > { %p3309_p0 = scmp.ne.s32.totalorder %s3307_s25, %s3308_s0 }
 0xdf5   : > { %p3310_p1 = pnand %p3309_p0, %p3593_p5 }
 0xdf7   : > { %p3311_p2 = pneg %p3310_p1 }
 0xe43   : > { %v2055_v63 = vpop.permute.xlu2 %2054 }
 0xe44   : > { %v2057_v0 = vadd.f32 %v2055_v63, %v2016_v54 }
 0xe46   : > { %2791 = vtanh.f32 %v2057_v0  ;;  %v2500_v57 = vmul.f32 -1.442695, %v2057_v0 }
 0xe48   : > { %2793 = vpow2.f32 %v2500_v57 }
 0xe4c   : > { %v2792_v1 = vpop.eup %2791 }
 0xe4d   : > { %2079 = vrot.lane.b32.xlu0 %v2792_v1, %s3429_s1 }
 0xe4e   : > { %v2794_v2 = vpop.eup %2793 }
 0xe4f   : > { %v2062_v3 = vadd.f32 1.0, %v2794_v2 }
 0xe51   : > { %2795 = vrcp.f32 %v2062_v3  ;;  %v2074_v11 = vand.u32 2147483648, %v2062_v3  ;;  %vm2068_vm3 = vweird.f32 %v2062_v3  ;;  %v2072_v12 = vand.u32 2147483647, %v2062_v3 }
 0xe53   : > { %v2075_v14 = vor.u32 1.1754944e-38, %v2074_v11  ;;  %vm2073_vm10 = vcmp.eq.f32.partialorder %v2072_v12, 8.507059e+37 }
 0xe57   : > { %v2796_v6 = vpop.eup %2795 }
 0xe58   : > { %v2064_v7 = vmul.f32 %v2796_v6, %v2062_v3  ;;  %vm2069_vm2 = vweird.f32 %v2796_v6 }
 0xe59   : > { %vm2070_vm7 = vmor %vm2068_vm3, %vm2069_vm2 }
 0xe5a   : > { %v2065_v8 = vsub.f32 1.0, %v2064_v7 }
 0xe5c   : > { %v2066_v9 = vmul.f32 %v2796_v6, %v2065_v8 }
 0xe5e   : > { %v2067_v10 = vadd.f32 %v2796_v6, %v2066_v9 }
 0xe60   : > { %v2071_v13 = vsel %vm2070_vm7, %v2796_v6, %v2067_v10 }
 0xe61   : > { %v2076_v15 = vsel %vm2073_vm10, %v2075_v14, %v2071_v13 }
 0xebf   : > { %v2080_v17 = vpop.permute.xlu0 %2079 }
 0xec0   : > { %v2082_v18 = vmul.f32 %v2080_v17, %v2076_v15 }
 0xec2   : > { %v2084_v19 = vmul.f32 %v2083_v16, %v2082_v18 }
 0xec4   : > { %2086 = vrot.lane.b32.xlu1 %v2084_v19, %s3429_s1 }
 0xf36   : > { %v2087_v22 = vpop.permute.xlu1 %2086 }
 0xf37   : > { %v2089_v23 = vadd.f32 %v2087_v22, %v3968_v48 }
 0xf39   : > { %2099 = vrot.lane.b32.xlu1 %v2089_v23, %s3421_s4  ;;  %2095 = vrot.lane.b32.xlu0 %v2089_v23, %s3424_s10  ;;  %v2104_v24 = vmax.f32 %v2089_v23, 0.0  ;;  %s2503_s4 = sld [smem:[#allocation2 + $0x5]] }
 0xf3a   : > { %2091 = vrot.lane.b32.xlu2 %v2089_v23, %s3422_s30  ;;  %s989_s30 = sand.u32 1, %s3386_s26  }
 0xf3b   : > { %2501 = vmatmul.msk.f32.vlgmr.msra.gmra.mxu1 %vm1051_vm1, %v2104_v24  ;;  %s2451_s10 = sshll.u32 %s989_s30, 2  ;;  %s2172_s6 = scalar_lea.sflag [#allocation4], %s989_s30 }
 0xf3c   : > { %s991_s1 = scalar_lea.vmem [#allocation30], %s2451_s10  ;;  %s3312_s10 = scalar_lea.hbm %s4117_s3, 8 }
 0xf3d   : > { %s2184_s28 = sshll.u32 %s991_s1, 4  ;;  %p3314_p4 = scmp.lt.s32.totalorder %s3312_s10, %s3308_s0  ;;  %s2185_s28 = int_to_ptr.vmem [resolvable:$true] %s2184_s28 }
 0xf3f   : > { %v2166_v38 = vstv %s2503_s4  ;;  %p3315_p7 = por %p3314_p4, %p3313_p3 }
 0xf41   : > { %p3316_p8 = pnand %p3315_p7, %p3311_p2 }
 0xf94   : > { %v2092_v30 = vpop.permute.xlu2 %2091 }
 0xf95   : > { %v2094_v31 = vadd.f32 %v2092_v30, %v2089_v23 }
 0xfab   : > { %v2096_v32 = vpop.permute.xlu0 %2095  ;;  %v2100_v35 = vpop.permute.xlu1 %2099 }
 0xfac   : > { %v2098_v33 = vadd.f32 %v2096_v32, %v2094_v31 }
 0xfae   : > { %v2102_v36 = vadd.f32 %v2100_v35, %v2098_v33 }
 0xfb0   : > { %v2103_v40 = vmul.f32 0.25, %v2102_v36 }
 0xfb8   : > { %v2133_v27 = vpop.f32.mrf.mxu1 }
 0xfb9   : > { %v2134_v28 = vadd.f32 %v2743_v26, %v2133_v27 }
 0xfbb   : > { %v2136_v29 = vmax.f32 %v2134_v28, 0.0 }
 0xfbd   : > { %2502 = vmatmul.msk.f32.vlgmr.msra.gmra.mxu2 %vm1007_vm0, %v2136_v29  ;;  %vm2169_vm0 = vcmask 60416  }
0x1040   : > { %v2162_v37 = vpop.f32.mrf.mxu2 }
0x1041   : > { %v2163_v39 = vadd.f32 %v2744_v34, %v2162_v37 }
0x1043   : > { %v2167_v41 = vmul.f32 %v2166_v38, %v2163_v39 }
0x1045   : > { %v2168_v42 = vadd.f32 %v2167_v41, %v2103_v40 }
0x1047   : > { %2170 = vst.msk [vmem:[%s991_s1] sm:$0xf] %vm2169_vm0, %v2168_v42 }
0x1048   : > { %3319 = shalt.err (!%p3316_p8)
}
0x1049   : > { %2576 = dma.vmem_to_hbm [thread:$0]  (%p3593_p5), %s2185_s28, 64, %s2187_s12, %s2172_s6  }
0x104a PF: > { %s4119_s30 = sld [smem:[#allocation44_spill]] }
0x104b   : > { %s4120_s2 = sld [smem:[#allocation42_spill]] }
0x1050   : > { %p2668_p9 = scmp.ge.s32.totalorder %s4119_s30, 2 }
0x1051   : > { %s2198_s21 = sand.u32 1, %s4120_s2  }
0x1052   : > { %p2631_p10 = pnand %p2668_p9, %p3597_p6  ;;  %s2199_s23 = scalar_lea.sflag [#allocation4], %s2198_s21 }
0x1054   : > { %p2632_p11 = pneg %p2631_p10 }
0x1056   : > { %3377 = dma.done.wait (%p2632_p11), %s2199_s23, 64  }
0x1057   : > { %3379 = vsyncadd (%p2632_p11), %s2199_s23, 4294967232  ;;  %s4122_s28 = sld [smem:[#allocation45_spill]]  ;;  %s4125_s5 = smov %s3386_s26 }
0x1058   : > { %s4123_s1 = sld [smem:[#allocation43_spill]] }
0x1059   : > { %s4124_s27 = sld [smem:[#allocation46_spill]] }
0x105d   : > { %p44_p12 = scmp.ge.s32.totalorder %s4122_s28, 4  }
0x105e   : > { %s4126_s26 = smov %s4123_s1 }
0x105f   :  { %46 = sbr.rel (!%p44_p12) target bundleno = 28 (0x1c), region = 221 }
0x1064   :  { %2205 = vsyncpa [#allocation3], 1 }
0x1065   :  { %2207 = vsyncpa [#allocation3 + $0x1], 1 }
0x1066   :  { %2208 = vsyncpa [#allocation8], 1 }
0x1067   :  { %2209 = vsyncpa [#allocation11], 1 }
0x1068   :  { %2210 = vsyncpa [#allocation14], 1 }
0x1069   :  { %2211 = vsyncpa [#allocation17], 1 }
0x106a   :  { %2212 = vsyncpa [#allocation20], 1 }
0x106b   :  { %2213 = vsyncpa [#allocation23], 1 }
0x106c   :  { %2214 = vsyncpa [#allocation26], 1 }
0x106d   :  { %2215 = vsyncpa [#allocation29], 1 }
0x106e   :  { %2216 = vsyncpa [#allocation4], 1 }
0x106f   :  { %2218 = vsyncpa [#allocation4 + $0x1], 1 }
0x1070   :  { %2219 = vsyncpa [#allocation5], 1 }
0x1071   :  { %2221 = vsyncpa [#allocation5 + $0x1], 1 }

</bundles_post_ra>
